<compile_context>
chip_gen: v7x
topology: tpu7x:2x2x1
jax: 0.10.0
libtpu: 0.0.40
codegen_flags: <defaults>
</compile_context>

<pallas_src>
import functools

import numpy as np
import jax
import jax.numpy as jnp
from jax.experimental import pallas as pl
from jax.experimental.pallas import tpu as pltpu


# ---------------------------------------------------------------------------
# Host-side one-time weight preparation (banded conv matrices, fc1 permutation)
# ---------------------------------------------------------------------------
def _build_conv1_rhs(w1):
    """w1 (6,3,5,5) OIHW -> banded RHS (480, 168).

    LHS lane order (per kh segment): w_in*3 + c   (w_in in [0,32), c in [0,3))
    Output lane order:               dw*84 + q*6 + co  (q in [0,14), pool col phase dw)
    """
    w1 = np.asarray(w1, dtype=np.float32)
    rhs = np.zeros((5, 32, 3, 2, 14, 6), dtype=np.float32)  # (kh, w_in, c, dw, q, co)
    for kh in range(5):
        for dw in range(2):
            for q in range(14):
                j = 2 * q + dw
                for kw in range(5):
                    rhs[kh, j + kw, :, dw, q, :] = w1[:, :, kh, kw].T
    return rhs.reshape(5 * 32 * 3, 2 * 14 * 6)


def _build_conv2_rhs(w2):
    """w2 (16,6,5,5) -> banded RHS (420, 160).

    LHS lane order (per kh segment): q_in*6 + c   (q_in in [0,14), c in [0,6))
    Output lane order:               dw*80 + q2*16 + co  (q2 in [0,5))
    """
    w2 = np.asarray(w2, dtype=np.float32)
    rhs = np.zeros((5, 14, 6, 2, 5, 16), dtype=np.float32)  # (kh, q_in, c, dw, q2, co)
    for kh in range(5):
        for dw in range(2):
            for q2 in range(5):
                j2 = 2 * q2 + dw
                for kw in range(5):
                    rhs[kh, j2 + kw, :, dw, q2, :] = w2[:, :, kh, kw].T
    return rhs.reshape(5 * 14 * 6, 2 * 5 * 16)


def _build_fc1_rhs(wfc1):
    """wfc1 (120, 400) with PyTorch flatten order f = c*25 + h*5 + w  ->  (80, 600).

    Row order matches pooled2 lanes (q2*16 + co); column = p2*120 + F so that the
    per-sample sum over the 5 pooled rows reproduces the full 400-feature contraction.
    """
    wfc1 = np.asarray(wfc1, dtype=np.float32)
    rhs = np.zeros((5, 16, 5, 120), dtype=np.float32)        # (q2, co, p2, F)
    for c in range(16):
        for h in range(5):
            for w in range(5):
                rhs[w, c, h, :] = wfc1[:, c * 25 + h * 5 + w]
    return rhs.reshape(80, 5 * 120)


def prepare_params(p):
    f32 = np.float32
    return {
        "wb1":   jnp.asarray(_build_conv1_rhs(p["w1"]), dtype=jnp.bfloat16),
        "b1row": jnp.asarray(np.tile(np.asarray(p["b1"], f32), 28).reshape(1, 168)),
        "wb2":   jnp.asarray(_build_conv2_rhs(p["w2"]), dtype=jnp.bfloat16),
        "b2row": jnp.asarray(np.tile(np.asarray(p["b2"], f32), 10).reshape(1, 160)),
        "wfc1s": jnp.asarray(_build_fc1_rhs(p["wfc1"]), dtype=jnp.bfloat16),
        "bfc1":  jnp.asarray(np.asarray(p["bfc1"], f32).reshape(1, 120)),
        "wfc2t": jnp.asarray(np.asarray(p["wfc2"], f32).T, dtype=jnp.bfloat16),
        "bfc2":  jnp.asarray(np.asarray(p["bfc2"], f32).reshape(1, 84)),
        "wfc3t": jnp.asarray(np.asarray(p["wfc3"], f32).T, dtype=jnp.bfloat16),
        "bfc3":  jnp.asarray(np.asarray(p["bfc3"], f32).reshape(1, 10)),
    }


# ---------------------------------------------------------------------------
# The single fused Pallas kernel
# ---------------------------------------------------------------------------
def _net_kernel(x4_ref, wb1_ref, b1row_ref, wb2_ref, b2row_ref,
                wfc1s_ref, bfc1_ref, wfc2t_ref, bfc2_ref,
                wfc3t_ref, bfc3_ref, o_ref, *, N):
    """Whole Net forward.  Row bookkeeping:

    x4_ref[m, u, w*3+c] = input pixel at image row 4u+m (rows are n*32+h), col w, chan c.
    conv1 group (dh, tpar): output row u <-> pooled row p = 2u + tpar - 16n (valid
    u in [8n, 8n+7)); pooling = max over dh (rows) and the two 84-lane slabs (cols).
    pooled1[tpar][u, q*6+c] = conv1 activation a1[n, c, p, q].
    conv2 group dh2: row t2 = 8n + p2; pooled2[t2, q2*16+co] = a2[n, co, p2, q2].
    fc1: one matmul against the flatten-absorbing (80, 600) weight + 5 row/lane slabs
    summed per sample.
    """
    R1 = 8 * N        # rows per conv1 pool/parity group
    R2 = 8 * N - 3    # rows per conv2 pool group

    # ---- conv1 + bias + ReLU + 2x2 max-pool : ONE MXU matmul -----------------
    def conv1_group(dh, tpar):
        pieces = []
        for kh in range(5):
            v = 2 * tpar + dh + kh
            m, s = v & 3, v >> 2
            pieces.append(x4_ref[m, s:s + R1, :])            # (R1, 96) f32
        return jnp.concatenate(pieces, axis=1)               # (R1, 480)

    lhs1 = jnp.concatenate(
        [conv1_group(dh, tpar) for dh in (0, 1) for tpar in (0, 1)],
        axis=0).astype(jnp.bfloat16)                         # (4*R1, 480)
    y1 = jnp.dot(lhs1, wb1_ref[...], preferred_element_type=jnp.float32)
    y1 = jnp.maximum(y1 + b1row_ref[...], 0.0)               # (4*R1, 168) f32

    pooled1 = []
    for tpar in (0, 1):
        r0 = y1[(0 * 2 + tpar) * R1:(0 * 2 + tpar) * R1 + R1]   # dh = 0 group
        r1 = y1[(1 * 2 + tpar) * R1:(1 * 2 + tpar) * R1 + R1]   # dh = 1 group
        pooled1.append(jnp.maximum(
            jnp.maximum(r0[:, 0:84], r0[:, 84:168]),
            jnp.maximum(r1[:, 0:84], r1[:, 84:168])))        # (R1, 84) f32

    # ---- conv2 + bias + ReLU + 2x2 max-pool : two MXU matmuls ----------------
    y2 = []
    for dh2 in (0, 1):
        pieces = []
        for kh2 in range(5):
            v = dh2 + kh2
            par, start = v & 1, v >> 1
            pieces.append(pooled1[par][start:start + R2, :])  # (R2, 84)
        lhs2 = jnp.concatenate(pieces, axis=1).astype(jnp.bfloat16)  # (R2, 420)
        y = jnp.dot(lhs2, wb2_ref[...], preferred_element_type=jnp.float32)
        y2.append(jnp.maximum(y + b2row_ref[...], 0.0))       # (R2, 160) f32

    pooled2 = jnp.maximum(
        jnp.maximum(y2[0][:, 0:80], y2[0][:, 80:160]),
        jnp.maximum(y2[1][:, 0:80], y2[1][:, 80:160]))        # (R2, 80) f32

    # ---- fc1 (flatten absorbed in weight layout) + fc2 + fc3 -----------------
    ymm = jnp.dot(pooled2.astype(jnp.bfloat16), wfc1s_ref[...],
                  preferred_element_type=jnp.float32)         # (R2, 600) f32
    rows = []
    for n in range(N):
        acc = ymm[n * 8 + 0:n * 8 + 1, 0:120]
        for p2 in range(1, 5):
            acc = acc + ymm[n * 8 + p2:n * 8 + p2 + 1, p2 * 120:(p2 + 1) * 120]
        rows.append(acc)                                      # (1, 120)
    h = jnp.concatenate(rows, axis=0)                         # (N, 120)
    h = jnp.maximum(h + bfc1_ref[...], 0.0).astype(jnp.bfloat16)
    h = jnp.dot(h, wfc2t_ref[...], preferred_element_type=jnp.float32)
    h = jnp.maximum(h + bfc2_ref[...], 0.0).astype(jnp.bfloat16)
    out = jnp.dot(h, wfc3t_ref[...], preferred_element_type=jnp.float32) + bfc3_ref[...]
    o_ref[...] = out.astype(o_ref.dtype)


# ---------------------------------------------------------------------------
# Wrapper: one pallas_call, whole-array VMEM blocks (everything < 1 MB)
# ---------------------------------------------------------------------------
def _full_spec(shape):
    nd = len(shape)
    return pl.BlockSpec(tuple(shape), lambda i, _nd=nd: (0,) * _nd)


def net_forward(x_nchw, prep):
    N = x_nchw.shape[0]
    assert x_nchw.shape[1:] == (3, 32, 32), x_nchw.shape

    # Only remaining per-call glue: 24 KB layout change of the raw input.
    # rows = n*32 + h, lanes = w*3 + c; then split rows by (row mod 4) for the
    # pool/parity-phased conv1 slices, pad with zero rows for the shifted reads.
    x2 = jnp.transpose(x_nchw, (0, 2, 3, 1)).reshape(N * 32, 96)
    x4 = jnp.transpose(x2.reshape(N * 8, 4, 96), (1, 0, 2))       # (4, N*8, 96)
    x4 = jnp.pad(x4, ((0, 0), (0, 8), (0, 0)))                    # (4, N*8+8, 96) f32

    args = (x4, prep["wb1"], prep["b1row"], prep["wb2"], prep["b2row"],
            prep["wfc1s"], prep["bfc1"], prep["wfc2t"], prep["bfc2"],
            prep["wfc3t"], prep["bfc3"])

    return pl.pallas_call(
        functools.partial(_net_kernel, N=N),
        out_shape=jax.ShapeDtypeStruct((N, 10), jnp.float32),
        grid=(1,),
        in_specs=[_full_spec(a.shape) for a in args],
        out_specs=_full_spec((N, 10)),
        compiler_params=pltpu.CompilerParams(dimension_semantics=("arbitrary",)),
    )(*args)


# ---------------------------------------------------------------------------
# Pure-JAX reference (for correctness check) and param init
# ---------------------------------------------------------------------------
def net_forward_ref(x_nchw, p):
    dn = ("NCHW", "OIHW", "NCHW")
    y = jax.lax.conv_general_dilated(x_nchw, p["w1"], (1, 1), "VALID",
                                     dimension_numbers=dn)
    y = jax.nn.relu(y + p["b1"].reshape(1, -1, 1, 1))
    y = jax.lax.reduce_window(y, -jnp.inf, jax.lax.max,
                              (1, 1, 2, 2), (1, 1, 2, 2), "VALID")
    y = jax.lax.conv_general_dilated(y, p["w2"], (1, 1), "VALID",
                                     dimension_numbers=dn)
    y = jax.nn.relu(y + p["b2"].reshape(1, -1, 1, 1))
    y = jax.lax.reduce_window(y, -jnp.inf, jax.lax.max,
                              (1, 1, 2, 2), (1, 1, 2, 2), "VALID")
    y = y.reshape(y.shape[0], -1)
    y = jax.nn.relu(y @ p["wfc1"].T + p["bfc1"])
    y = jax.nn.relu(y @ p["wfc2"].T + p["bfc2"])
    return y @ p["wfc3"].T + p["bfc3"]


def init_params(key):
    ks = jax.random.split(key, 10)

    def rnd(k, shape, scale):
        return (scale * jax.random.normal(k, shape)).astype(jnp.float32)

    return {
        "w1":   rnd(ks[0], (6, 3, 5, 5), 0.1),
        "b1":   rnd(ks[1], (6,), 0.1),
        "w2":   rnd(ks[2], (16, 6, 5, 5), 0.1),
        "b2":   rnd(ks[3], (16,), 0.1),
        "wfc1": rnd(ks[4], (120, 400), 0.05),   # PyTorch Linear: (out, in)
        "bfc1": rnd(ks[5], (120,), 0.05),
        "wfc2": rnd(ks[6], (84, 120), 0.05),
        "bfc2": rnd(ks[7], (84,), 0.05),
        "wfc3": rnd(ks[8], (10, 84), 0.05),
        "bfc3": rnd(ks[9], (10,), 0.05),
    }


if __name__ == "__main__":
    key = jax.random.PRNGKey(0)
    pkey, xkey = jax.random.split(key)
    params = init_params(pkey)
    prep = prepare_params(params)           # one-time banded/permuted bf16 weights
    # 32x32 spatial is required by fc1's 16*5*5 input size; batch kept small.
    x = jax.random.normal(xkey, (2, 3, 32, 32), dtype=jnp.float32)

    out = jax.block_until_ready(jax.jit(net_forward)(x, prep))
    assert out.shape == (2, 10), out.shape

    ref = jax.block_until_ready(jax.jit(net_forward_ref)(x, params))
    err = float(jnp.max(jnp.abs(out - ref)))
    # bf16 MXU operands -> ~1e-2-scale numerical drift vs. the f32 reference (per
    # review); real layout/indexing bugs would produce O(0.1-1) errors.
    assert err < 3e-2, f"max abs diff vs reference = {err}"

    print("KERNEL_OK")
</pallas_src>

<mosaic_0001>
module attributes {stable_mosaic.version = 11 : i64} {
  func.func @_net_kernel(%arg0: i32, %arg1: memref<4x24x96xf32, #tpu.memory_space<vmem>>, %arg2: memref<480x168xbf16, #tpu.memory_space<vmem>>, %arg3: memref<1x168xf32, #tpu.memory_space<vmem>>, %arg4: memref<420x160xbf16, #tpu.memory_space<vmem>>, %arg5: memref<1x160xf32, #tpu.memory_space<vmem>>, %arg6: memref<80x600xbf16, #tpu.memory_space<vmem>>, %arg7: memref<1x120xf32, #tpu.memory_space<vmem>>, %arg8: memref<120x84xbf16, #tpu.memory_space<vmem>>, %arg9: memref<1x84xf32, #tpu.memory_space<vmem>>, %arg10: memref<84x10xbf16, #tpu.memory_space<vmem>>, %arg11: memref<1x10xf32, #tpu.memory_space<vmem>>, %arg12: memref<2x10xf32, #tpu.memory_space<vmem>>) attributes {dimension_semantics = [#tpu.dimension_semantics<arbitrary>], iteration_bounds = array<i64: 1>, scalar_prefetch = 0 : i64, scratch_operands = 0 : i64, tpu.core_type = #tpu.core_type<tc>, window_params = [{pipeline_mode = #tpu.pipeline_mode<synchronous>, transform_indices = @transform_0, window_bounds = array<i64: 4, 24, 96>}, {pipeline_mode = #tpu.pipeline_mode<synchronous>, transform_indices = @transform_1, window_bounds = array<i64: 480, 168>}, {pipeline_mode = #tpu.pipeline_mode<synchronous>, transform_indices = @transform_2, window_bounds = array<i64: 1, 168>}, {pipeline_mode = #tpu.pipeline_mode<synchronous>, transform_indices = @transform_3, window_bounds = array<i64: 420, 160>}, {pipeline_mode = #tpu.pipeline_mode<synchronous>, transform_indices = @transform_4, window_bounds = array<i64: 1, 160>}, {pipeline_mode = #tpu.pipeline_mode<synchronous>, transform_indices = @transform_5, window_bounds = array<i64: 80, 600>}, {pipeline_mode = #tpu.pipeline_mode<synchronous>, transform_indices = @transform_6, window_bounds = array<i64: 1, 120>}, {pipeline_mode = #tpu.pipeline_mode<synchronous>, transform_indices = @transform_7, window_bounds = array<i64: 120, 84>}, {pipeline_mode = #tpu.pipeline_mode<synchronous>, transform_indices = @transform_8, window_bounds = array<i64: 1, 84>}, {pipeline_mode = #tpu.pipeline_mode<synchronous>, transform_indices = @transform_9, window_bounds = array<i64: 84, 10>}, {pipeline_mode = #tpu.pipeline_mode<synchronous>, transform_indices = @transform_10, window_bounds = array<i64: 1, 10>}, {pipeline_mode = #tpu.pipeline_mode<synchronous>, transform_indices = @transform_11, window_bounds = array<i64: 2, 10>}]} {
    %c0 = arith.constant 0 : index
    %c0_0 = arith.constant 0 : index
    %c0_1 = arith.constant 0 : index
    %0 = vector.load %arg1[%c0, %c0_0, %c0_1] : memref<4x24x96xf32, #tpu.memory_space<vmem>>, vector<1x16x96xf32>
    %1 = vector.shape_cast %0 : vector<1x16x96xf32> to vector<16x96xf32>
    %c1 = arith.constant 1 : index
    %c0_2 = arith.constant 0 : index
    %c0_3 = arith.constant 0 : index
    %2 = vector.load %arg1[%c1, %c0_2, %c0_3] : memref<4x24x96xf32, #tpu.memory_space<vmem>>, vector<1x16x96xf32>
    %3 = vector.shape_cast %2 : vector<1x16x96xf32> to vector<16x96xf32>
    %c2 = arith.constant 2 : index
    %c0_4 = arith.constant 0 : index
    %c0_5 = arith.constant 0 : index
    %4 = vector.load %arg1[%c2, %c0_4, %c0_5] : memref<4x24x96xf32, #tpu.memory_space<vmem>>, vector<1x16x96xf32>
    %5 = vector.shape_cast %4 : vector<1x16x96xf32> to vector<16x96xf32>
    %c3 = arith.constant 3 : index
    %c0_6 = arith.constant 0 : index
    %c0_7 = arith.constant 0 : index
    %6 = vector.load %arg1[%c3, %c0_6, %c0_7] : memref<4x24x96xf32, #tpu.memory_space<vmem>>, vector<1x16x96xf32>
    %7 = vector.shape_cast %6 : vector<1x16x96xf32> to vector<16x96xf32>
    %c0_8 = arith.constant 0 : index
    %c1_9 = arith.constant 1 : index
    %c0_10 = arith.constant 0 : index
    %8 = vector.load %arg1[%c0_8, %c1_9, %c0_10] : memref<4x24x96xf32, #tpu.memory_space<vmem>>, vector<1x16x96xf32>
    %9 = vector.shape_cast %8 : vector<1x16x96xf32> to vector<16x96xf32>
    %10 = tpu.concatenate %1, %3, %5, %7, %9 in 1 : vector<16x96xf32>, vector<16x96xf32>, vector<16x96xf32>, vector<16x96xf32>, vector<16x96xf32> -> vector<16x480xf32>
    %c2_11 = arith.constant 2 : index
    %c0_12 = arith.constant 0 : index
    %c0_13 = arith.constant 0 : index
    %11 = vector.load %arg1[%c2_11, %c0_12, %c0_13] : memref<4x24x96xf32, #tpu.memory_space<vmem>>, vector<1x16x96xf32>
    %12 = vector.shape_cast %11 : vector<1x16x96xf32> to vector<16x96xf32>
    %c3_14 = arith.constant 3 : index
    %c0_15 = arith.constant 0 : index
    %c0_16 = arith.constant 0 : index
    %13 = vector.load %arg1[%c3_14, %c0_15, %c0_16] : memref<4x24x96xf32, #tpu.memory_space<vmem>>, vector<1x16x96xf32>
    %14 = vector.shape_cast %13 : vector<1x16x96xf32> to vector<16x96xf32>
    %c0_17 = arith.constant 0 : index
    %c1_18 = arith.constant 1 : index
    %c0_19 = arith.constant 0 : index
    %15 = vector.load %arg1[%c0_17, %c1_18, %c0_19] : memref<4x24x96xf32, #tpu.memory_space<vmem>>, vector<1x16x96xf32>
    %16 = vector.shape_cast %15 : vector<1x16x96xf32> to vector<16x96xf32>
    %c1_20 = arith.constant 1 : index
    %c1_21 = arith.constant 1 : index
    %c0_22 = arith.constant 0 : index
    %17 = vector.load %arg1[%c1_20, %c1_21, %c0_22] : memref<4x24x96xf32, #tpu.memory_space<vmem>>, vector<1x16x96xf32>
    %18 = vector.shape_cast %17 : vector<1x16x96xf32> to vector<16x96xf32>
    %c2_23 = arith.constant 2 : index
    %c1_24 = arith.constant 1 : index
    %c0_25 = arith.constant 0 : index
    %19 = vector.load %arg1[%c2_23, %c1_24, %c0_25] : memref<4x24x96xf32, #tpu.memory_space<vmem>>, vector<1x16x96xf32>
    %20 = vector.shape_cast %19 : vector<1x16x96xf32> to vector<16x96xf32>
    %21 = tpu.concatenate %12, %14, %16, %18, %20 in 1 : vector<16x96xf32>, vector<16x96xf32>, vector<16x96xf32>, vector<16x96xf32>, vector<16x96xf32> -> vector<16x480xf32>
    %c1_26 = arith.constant 1 : index
    %c0_27 = arith.constant 0 : index
    %c0_28 = arith.constant 0 : index
    %22 = vector.load %arg1[%c1_26, %c0_27, %c0_28] : memref<4x24x96xf32, #tpu.memory_space<vmem>>, vector<1x16x96xf32>
    %23 = vector.shape_cast %22 : vector<1x16x96xf32> to vector<16x96xf32>
    %c2_29 = arith.constant 2 : index
    %c0_30 = arith.constant 0 : index
    %c0_31 = arith.constant 0 : index
    %24 = vector.load %arg1[%c2_29, %c0_30, %c0_31] : memref<4x24x96xf32, #tpu.memory_space<vmem>>, vector<1x16x96xf32>
    %25 = vector.shape_cast %24 : vector<1x16x96xf32> to vector<16x96xf32>
    %c3_32 = arith.constant 3 : index
    %c0_33 = arith.constant 0 : index
    %c0_34 = arith.constant 0 : index
    %26 = vector.load %arg1[%c3_32, %c0_33, %c0_34] : memref<4x24x96xf32, #tpu.memory_space<vmem>>, vector<1x16x96xf32>
    %27 = vector.shape_cast %26 : vector<1x16x96xf32> to vector<16x96xf32>
    %c0_35 = arith.constant 0 : index
    %c1_36 = arith.constant 1 : index
    %c0_37 = arith.constant 0 : index
    %28 = vector.load %arg1[%c0_35, %c1_36, %c0_37] : memref<4x24x96xf32, #tpu.memory_space<vmem>>, vector<1x16x96xf32>
    %29 = vector.shape_cast %28 : vector<1x16x96xf32> to vector<16x96xf32>
    %c1_38 = arith.constant 1 : index
    %c1_39 = arith.constant 1 : index
    %c0_40 = arith.constant 0 : index
    %30 = vector.load %arg1[%c1_38, %c1_39, %c0_40] : memref<4x24x96xf32, #tpu.memory_space<vmem>>, vector<1x16x96xf32>
    %31 = vector.shape_cast %30 : vector<1x16x96xf32> to vector<16x96xf32>
    %32 = tpu.concatenate %23, %25, %27, %29, %31 in 1 : vector<16x96xf32>, vector<16x96xf32>, vector<16x96xf32>, vector<16x96xf32>, vector<16x96xf32> -> vector<16x480xf32>
    %c3_41 = arith.constant 3 : index
    %c0_42 = arith.constant 0 : index
    %c0_43 = arith.constant 0 : index
    %33 = vector.load %arg1[%c3_41, %c0_42, %c0_43] : memref<4x24x96xf32, #tpu.memory_space<vmem>>, vector<1x16x96xf32>
    %34 = vector.shape_cast %33 : vector<1x16x96xf32> to vector<16x96xf32>
    %c0_44 = arith.constant 0 : index
    %c1_45 = arith.constant 1 : index
    %c0_46 = arith.constant 0 : index
    %35 = vector.load %arg1[%c0_44, %c1_45, %c0_46] : memref<4x24x96xf32, #tpu.memory_space<vmem>>, vector<1x16x96xf32>
    %36 = vector.shape_cast %35 : vector<1x16x96xf32> to vector<16x96xf32>
    %c1_47 = arith.constant 1 : index
    %c1_48 = arith.constant 1 : index
    %c0_49 = arith.constant 0 : index
    %37 = vector.load %arg1[%c1_47, %c1_48, %c0_49] : memref<4x24x96xf32, #tpu.memory_space<vmem>>, vector<1x16x96xf32>
    %38 = vector.shape_cast %37 : vector<1x16x96xf32> to vector<16x96xf32>
    %c2_50 = arith.constant 2 : index
    %c1_51 = arith.constant 1 : index
    %c0_52 = arith.constant 0 : index
    %39 = vector.load %arg1[%c2_50, %c1_51, %c0_52] : memref<4x24x96xf32, #tpu.memory_space<vmem>>, vector<1x16x96xf32>
    %40 = vector.shape_cast %39 : vector<1x16x96xf32> to vector<16x96xf32>
    %c3_53 = arith.constant 3 : index
    %c1_54 = arith.constant 1 : index
    %c0_55 = arith.constant 0 : index
    %41 = vector.load %arg1[%c3_53, %c1_54, %c0_55] : memref<4x24x96xf32, #tpu.memory_space<vmem>>, vector<1x16x96xf32>
    %42 = vector.shape_cast %41 : vector<1x16x96xf32> to vector<16x96xf32>
    %43 = tpu.concatenate %34, %36, %38, %40, %42 in 1 : vector<16x96xf32>, vector<16x96xf32>, vector<16x96xf32>, vector<16x96xf32>, vector<16x96xf32> -> vector<16x480xf32>
    %44 = tpu.concatenate %10, %21, %32, %43 in 0 : vector<16x480xf32>, vector<16x480xf32>, vector<16x480xf32>, vector<16x480xf32> -> vector<64x480xf32>
    %45 = arith.truncf %44 : vector<64x480xf32> to vector<64x480xbf16>
    %c0_56 = arith.constant 0 : index
    %c0_57 = arith.constant 0 : index
    %46 = vector.load %arg2[%c0_56, %c0_57] : memref<480x168xbf16, #tpu.memory_space<vmem>>, vector<480x168xbf16>
    %cst = arith.constant dense<0.000000e+00> : vector<64x168xf32>
    %47 = tpu.matmul %45, %46, %cst {dimension_numbers = #tpu.dot_dimension_numbers<[1], [0], [0], [1], [0, 0, 1, 1], [], []>} : vector<64x480xbf16>, vector<480x168xbf16>, vector<64x168xf32> -> vector<64x168xf32>
    %c0_58 = arith.constant 0 : index
    %c0_59 = arith.constant 0 : index
    %48 = vector.load %arg3[%c0_58, %c0_59] : memref<1x168xf32, #tpu.memory_space<vmem>>, vector<1x168xf32>
    %49 = vector.broadcast %48 : vector<1x168xf32> to vector<64x168xf32>
    %50 = arith.addf %47, %49 : vector<64x168xf32>
    %cst_60 = arith.constant 0.000000e+00 : f32
    %51 = vector.broadcast %cst_60 : f32 to vector<64x168xf32>
    %52 = arith.maximumf %50, %51 : vector<64x168xf32>
    %53 = vector.extract_strided_slice %52 {offsets = [0, 0], sizes = [16, 168], strides = [1, 1]} : vector<64x168xf32> to vector<16x168xf32>
    %54 = vector.extract_strided_slice %52 {offsets = [32, 0], sizes = [16, 168], strides = [1, 1]} : vector<64x168xf32> to vector<16x168xf32>
    %55 = vector.extract_strided_slice %53 {offsets = [0, 0], sizes = [16, 84], strides = [1, 1]} : vector<16x168xf32> to vector<16x84xf32>
    %56 = vector.extract_strided_slice %53 {offsets = [0, 84], sizes = [16, 84], strides = [1, 1]} : vector<16x168xf32> to vector<16x84xf32>
    %57 = arith.maximumf %55, %56 : vector<16x84xf32>
    %58 = vector.extract_strided_slice %54 {offsets = [0, 0], sizes = [16, 84], strides = [1, 1]} : vector<16x168xf32> to vector<16x84xf32>
    %59 = vector.extract_strided_slice %54 {offsets = [0, 84], sizes = [16, 84], strides = [1, 1]} : vector<16x168xf32> to vector<16x84xf32>
    %60 = arith.maximumf %58, %59 : vector<16x84xf32>
    %61 = arith.maximumf %57, %60 : vector<16x84xf32>
    %62 = vector.extract_strided_slice %52 {offsets = [16, 0], sizes = [16, 168], strides = [1, 1]} : vector<64x168xf32> to vector<16x168xf32>
    %63 = vector.extract_strided_slice %52 {offsets = [48, 0], sizes = [16, 168], strides = [1, 1]} : vector<64x168xf32> to vector<16x168xf32>
    %64 = vector.extract_strided_slice %62 {offsets = [0, 0], sizes = [16, 84], strides = [1, 1]} : vector<16x168xf32> to vector<16x84xf32>
    %65 = vector.extract_strided_slice %62 {offsets = [0, 84], sizes = [16, 84], strides = [1, 1]} : vector<16x168xf32> to vector<16x84xf32>
    %66 = arith.maximumf %64, %65 : vector<16x84xf32>
    %67 = vector.extract_strided_slice %63 {offsets = [0, 0], sizes = [16, 84], strides = [1, 1]} : vector<16x168xf32> to vector<16x84xf32>
    %68 = vector.extract_strided_slice %63 {offsets = [0, 84], sizes = [16, 84], strides = [1, 1]} : vector<16x168xf32> to vector<16x84xf32>
    %69 = arith.maximumf %67, %68 : vector<16x84xf32>
    %70 = arith.maximumf %66, %69 : vector<16x84xf32>
    %71 = vector.extract_strided_slice %61 {offsets = [0, 0], sizes = [13, 84], strides = [1, 1]} : vector<16x84xf32> to vector<13x84xf32>
    %72 = vector.extract_strided_slice %70 {offsets = [0, 0], sizes = [13, 84], strides = [1, 1]} : vector<16x84xf32> to vector<13x84xf32>
    %73 = vector.extract_strided_slice %61 {offsets = [1, 0], sizes = [13, 84], strides = [1, 1]} : vector<16x84xf32> to vector<13x84xf32>
    %74 = vector.extract_strided_slice %70 {offsets = [1, 0], sizes = [13, 84], strides = [1, 1]} : vector<16x84xf32> to vector<13x84xf32>
    %75 = vector.extract_strided_slice %61 {offsets = [2, 0], sizes = [13, 84], strides = [1, 1]} : vector<16x84xf32> to vector<13x84xf32>
    %76 = tpu.concatenate %71, %72, %73, %74, %75 in 1 : vector<13x84xf32>, vector<13x84xf32>, vector<13x84xf32>, vector<13x84xf32>, vector<13x84xf32> -> vector<13x420xf32>
    %77 = arith.truncf %76 : vector<13x420xf32> to vector<13x420xbf16>
    %c0_61 = arith.constant 0 : index
    %c0_62 = arith.constant 0 : index
    %78 = vector.load %arg4[%c0_61, %c0_62] : memref<420x160xbf16, #tpu.memory_space<vmem>>, vector<420x160xbf16>
    %cst_63 = arith.constant dense<0.000000e+00> : vector<13x160xf32>
    %79 = tpu.matmul %77, %78, %cst_63 {dimension_numbers = #tpu.dot_dimension_numbers<[1], [0], [0], [1], [0, 0, 1, 1], [], []>} : vector<13x420xbf16>, vector<420x160xbf16>, vector<13x160xf32> -> vector<13x160xf32>
    %c0_64 = arith.constant 0 : index
    %c0_65 = arith.constant 0 : index
    %80 = vector.load %arg5[%c0_64, %c0_65] : memref<1x160xf32, #tpu.memory_space<vmem>>, vector<1x160xf32>
    %81 = vector.broadcast %80 : vector<1x160xf32> to vector<13x160xf32>
    %82 = arith.addf %79, %81 : vector<13x160xf32>
    %cst_66 = arith.constant 0.000000e+00 : f32
    %83 = vector.broadcast %cst_66 : f32 to vector<13x160xf32>
    %84 = arith.maximumf %82, %83 : vector<13x160xf32>
    %85 = vector.extract_strided_slice %70 {offsets = [0, 0], sizes = [13, 84], strides = [1, 1]} : vector<16x84xf32> to vector<13x84xf32>
    %86 = vector.extract_strided_slice %61 {offsets = [1, 0], sizes = [13, 84], strides = [1, 1]} : vector<16x84xf32> to vector<13x84xf32>
    %87 = vector.extract_strided_slice %70 {offsets = [1, 0], sizes = [13, 84], strides = [1, 1]} : vector<16x84xf32> to vector<13x84xf32>
    %88 = vector.extract_strided_slice %61 {offsets = [2, 0], sizes = [13, 84], strides = [1, 1]} : vector<16x84xf32> to vector<13x84xf32>
    %89 = vector.extract_strided_slice %70 {offsets = [2, 0], sizes = [13, 84], strides = [1, 1]} : vector<16x84xf32> to vector<13x84xf32>
    %90 = tpu.concatenate %85, %86, %87, %88, %89 in 1 : vector<13x84xf32>, vector<13x84xf32>, vector<13x84xf32>, vector<13x84xf32>, vector<13x84xf32> -> vector<13x420xf32>
    %91 = arith.truncf %90 : vector<13x420xf32> to vector<13x420xbf16>
    %c0_67 = arith.constant 0 : index
    %c0_68 = arith.constant 0 : index
    %92 = vector.load %arg4[%c0_67, %c0_68] : memref<420x160xbf16, #tpu.memory_space<vmem>>, vector<420x160xbf16>
    %cst_69 = arith.constant dense<0.000000e+00> : vector<13x160xf32>
    %93 = tpu.matmul %91, %92, %cst_69 {dimension_numbers = #tpu.dot_dimension_numbers<[1], [0], [0], [1], [0, 0, 1, 1], [], []>} : vector<13x420xbf16>, vector<420x160xbf16>, vector<13x160xf32> -> vector<13x160xf32>
    %c0_70 = arith.constant 0 : index
    %c0_71 = arith.constant 0 : index
    %94 = vector.load %arg5[%c0_70, %c0_71] : memref<1x160xf32, #tpu.memory_space<vmem>>, vector<1x160xf32>
    %95 = vector.broadcast %94 : vector<1x160xf32> to vector<13x160xf32>
    %96 = arith.addf %93, %95 : vector<13x160xf32>
    %cst_72 = arith.constant 0.000000e+00 : f32
    %97 = vector.broadcast %cst_72 : f32 to vector<13x160xf32>
    %98 = arith.maximumf %96, %97 : vector<13x160xf32>
    %99 = vector.extract_strided_slice %84 {offsets = [0, 0], sizes = [13, 80], strides = [1, 1]} : vector<13x160xf32> to vector<13x80xf32>
    %100 = vector.extract_strided_slice %84 {offsets = [0, 80], sizes = [13, 80], strides = [1, 1]} : vector<13x160xf32> to vector<13x80xf32>
    %101 = arith.maximumf %99, %100 : vector<13x80xf32>
    %102 = vector.extract_strided_slice %98 {offsets = [0, 0], sizes = [13, 80], strides = [1, 1]} : vector<13x160xf32> to vector<13x80xf32>
    %103 = vector.extract_strided_slice %98 {offsets = [0, 80], sizes = [13, 80], strides = [1, 1]} : vector<13x160xf32> to vector<13x80xf32>
    %104 = arith.maximumf %102, %103 : vector<13x80xf32>
    %105 = arith.maximumf %101, %104 : vector<13x80xf32>
    %106 = arith.truncf %105 : vector<13x80xf32> to vector<13x80xbf16>
    %c0_73 = arith.constant 0 : index
    %c0_74 = arith.constant 0 : index
    %107 = vector.load %arg6[%c0_73, %c0_74] : memref<80x600xbf16, #tpu.memory_space<vmem>>, vector<80x600xbf16>
    %cst_75 = arith.constant dense<0.000000e+00> : vector<13x600xf32>
    %108 = tpu.matmul %106, %107, %cst_75 {dimension_numbers = #tpu.dot_dimension_numbers<[1], [0], [0], [1], [0, 0, 1, 1], [], []>} : vector<13x80xbf16>, vector<80x600xbf16>, vector<13x600xf32> -> vector<13x600xf32>
    %109 = vector.extract_strided_slice %108 {offsets = [0, 0], sizes = [1, 120], strides = [1, 1]} : vector<13x600xf32> to vector<1x120xf32>
    %110 = vector.extract_strided_slice %108 {offsets = [1, 120], sizes = [1, 120], strides = [1, 1]} : vector<13x600xf32> to vector<1x120xf32>
    %111 = arith.addf %109, %110 : vector<1x120xf32>
    %112 = vector.extract_strided_slice %108 {offsets = [2, 240], sizes = [1, 120], strides = [1, 1]} : vector<13x600xf32> to vector<1x120xf32>
    %113 = arith.addf %111, %112 : vector<1x120xf32>
    %114 = vector.extract_strided_slice %108 {offsets = [3, 360], sizes = [1, 120], strides = [1, 1]} : vector<13x600xf32> to vector<1x120xf32>
    %115 = arith.addf %113, %114 : vector<1x120xf32>
    %116 = vector.extract_strided_slice %108 {offsets = [4, 480], sizes = [1, 120], strides = [1, 1]} : vector<13x600xf32> to vector<1x120xf32>
    %117 = arith.addf %115, %116 : vector<1x120xf32>
    %118 = vector.extract_strided_slice %108 {offsets = [8, 0], sizes = [1, 120], strides = [1, 1]} : vector<13x600xf32> to vector<1x120xf32>
    %119 = vector.extract_strided_slice %108 {offsets = [9, 120], sizes = [1, 120], strides = [1, 1]} : vector<13x600xf32> to vector<1x120xf32>
    %120 = arith.addf %118, %119 : vector<1x120xf32>
    %121 = vector.extract_strided_slice %108 {offsets = [10, 240], sizes = [1, 120], strides = [1, 1]} : vector<13x600xf32> to vector<1x120xf32>
    %122 = arith.addf %120, %121 : vector<1x120xf32>
    %123 = vector.extract_strided_slice %108 {offsets = [11, 360], sizes = [1, 120], strides = [1, 1]} : vector<13x600xf32> to vector<1x120xf32>
    %124 = arith.addf %122, %123 : vector<1x120xf32>
    %125 = vector.extract_strided_slice %108 {offsets = [12, 480], sizes = [1, 120], strides = [1, 1]} : vector<13x600xf32> to vector<1x120xf32>
    %126 = arith.addf %124, %125 : vector<1x120xf32>
    %127 = tpu.concatenate %117, %126 in 0 : vector<1x120xf32>, vector<1x120xf32> -> vector<2x120xf32>
    %c0_76 = arith.constant 0 : index
    %c0_77 = arith.constant 0 : index
    %128 = vector.load %arg7[%c0_76, %c0_77] : memref<1x120xf32, #tpu.memory_space<vmem>>, vector<1x120xf32>
    %129 = vector.broadcast %128 : vector<1x120xf32> to vector<2x120xf32>
    %130 = arith.addf %127, %129 : vector<2x120xf32>
    %cst_78 = arith.constant 0.000000e+00 : f32
    %131 = vector.broadcast %cst_78 : f32 to vector<2x120xf32>
    %132 = arith.maximumf %130, %131 : vector<2x120xf32>
    %133 = arith.truncf %132 : vector<2x120xf32> to vector<2x120xbf16>
    %c0_79 = arith.constant 0 : index
    %c0_80 = arith.constant 0 : index
    %134 = vector.load %arg8[%c0_79, %c0_80] : memref<120x84xbf16, #tpu.memory_space<vmem>>, vector<120x84xbf16>
    %cst_81 = arith.constant dense<0.000000e+00> : vector<2x84xf32>
    %135 = tpu.matmul %133, %134, %cst_81 {dimension_numbers = #tpu.dot_dimension_numbers<[1], [0], [0], [1], [0, 0, 1, 1], [], []>} : vector<2x120xbf16>, vector<120x84xbf16>, vector<2x84xf32> -> vector<2x84xf32>
    %c0_82 = arith.constant 0 : index
    %c0_83 = arith.constant 0 : index
    %136 = vector.load %arg9[%c0_82, %c0_83] : memref<1x84xf32, #tpu.memory_space<vmem>>, vector<1x84xf32>
    %137 = vector.broadcast %136 : vector<1x84xf32> to vector<2x84xf32>
    %138 = arith.addf %135, %137 : vector<2x84xf32>
    %cst_84 = arith.constant 0.000000e+00 : f32
    %139 = vector.broadcast %cst_84 : f32 to vector<2x84xf32>
    %140 = arith.maximumf %138, %139 : vector<2x84xf32>
    %141 = arith.truncf %140 : vector<2x84xf32> to vector<2x84xbf16>
    %c0_85 = arith.constant 0 : index
    %c0_86 = arith.constant 0 : index
    %142 = vector.load %arg10[%c0_85, %c0_86] : memref<84x10xbf16, #tpu.memory_space<vmem>>, vector<84x10xbf16>
    %cst_87 = arith.constant dense<0.000000e+00> : vector<2x10xf32>
    %143 = tpu.matmul %141, %142, %cst_87 {dimension_numbers = #tpu.dot_dimension_numbers<[1], [0], [0], [1], [0, 0, 1, 1], [], []>} : vector<2x84xbf16>, vector<84x10xbf16>, vector<2x10xf32> -> vector<2x10xf32>
    %c0_88 = arith.constant 0 : index
    %c0_89 = arith.constant 0 : index
    %144 = vector.load %arg11[%c0_88, %c0_89] : memref<1x10xf32, #tpu.memory_space<vmem>>, vector<1x10xf32>
    %145 = vector.broadcast %144 : vector<1x10xf32> to vector<2x10xf32>
    %146 = arith.addf %143, %145 : vector<2x10xf32>
    %c0_90 = arith.constant 0 : index
    %c0_91 = arith.constant 0 : index
    %147 = vector.load %arg12[%c0_90, %c0_91] : memref<2x10xf32, #tpu.memory_space<vmem>>, vector<2x10xf32>
    tpu.vector_store %arg12[%c0_90, %c0_91], %146 {strides = array<i32>} : memref<2x10xf32, #tpu.memory_space<vmem>>, vector<2x10xf32>,
    return
  }
  func.func @transform_0(%arg0: i32) -> (i32, i32, i32) {
    %c0_i32 = arith.constant 0 : i32
    %c0_i32_0 = arith.constant 0 : i32
    %c0_i32_1 = arith.constant 0 : i32
    %c0_i32_2 = arith.constant 0 : i32
    return %c0_i32, %c0_i32_0, %c0_i32_1 : i32, i32, i32
  }
  func.func @transform_1(%arg0: i32) -> (i32, i32) {
    %c0_i32 = arith.constant 0 : i32
    %c0_i32_0 = arith.constant 0 : i32
    %c0_i32_1 = arith.constant 0 : i32
    return %c0_i32, %c0_i32_0 : i32, i32
  }
  func.func @transform_2(%arg0: i32) -> (i32, i32) {
    %c0_i32 = arith.constant 0 : i32
    %c0_i32_0 = arith.constant 0 : i32
    %c0_i32_1 = arith.constant 0 : i32
    return %c0_i32, %c0_i32_0 : i32, i32
  }
  func.func @transform_3(%arg0: i32) -> (i32, i32) {
    %c0_i32 = arith.constant 0 : i32
    %c0_i32_0 = arith.constant 0 : i32
    %c0_i32_1 = arith.constant 0 : i32
    return %c0_i32, %c0_i32_0 : i32, i32
  }
  func.func @transform_4(%arg0: i32) -> (i32, i32) {
    %c0_i32 = arith.constant 0 : i32
    %c0_i32_0 = arith.constant 0 : i32
    %c0_i32_1 = arith.constant 0 : i32
    return %c0_i32, %c0_i32_0 : i32, i32
  }
  func.func @transform_5(%arg0: i32) -> (i32, i32) {
    %c0_i32 = arith.constant 0 : i32
    %c0_i32_0 = arith.constant 0 : i32
    %c0_i32_1 = arith.constant 0 : i32
    return %c0_i32, %c0_i32_0 : i32, i32
  }
  func.func @transform_6(%arg0: i32) -> (i32, i32) {
    %c0_i32 = arith.constant 0 : i32
    %c0_i32_0 = arith.constant 0 : i32
    %c0_i32_1 = arith.constant 0 : i32
    return %c0_i32, %c0_i32_0 : i32, i32
  }
  func.func @transform_7(%arg0: i32) -> (i32, i32) {
    %c0_i32 = arith.constant 0 : i32
    %c0_i32_0 = arith.constant 0 : i32
    %c0_i32_1 = arith.constant 0 : i32
    return %c0_i32, %c0_i32_0 : i32, i32
  }
  func.func @transform_8(%arg0: i32) -> (i32, i32) {
    %c0_i32 = arith.constant 0 : i32
    %c0_i32_0 = arith.constant 0 : i32
    %c0_i32_1 = arith.constant 0 : i32
    return %c0_i32, %c0_i32_0 : i32, i32
  }
  func.func @transform_9(%arg0: i32) -> (i32, i32) {
    %c0_i32 = arith.constant 0 : i32
    %c0_i32_0 = arith.constant 0 : i32
    %c0_i32_1 = arith.constant 0 : i32
    return %c0_i32, %c0_i32_0 : i32, i32
  }
  func.func @transform_10(%arg0: i32) -> (i32, i32) {
    %c0_i32 = arith.constant 0 : i32
    %c0_i32_0 = arith.constant 0 : i32
    %c0_i32_1 = arith.constant 0 : i32
    return %c0_i32, %c0_i32_0 : i32, i32
  }
  func.func @transform_11(%arg0: i32) -> (i32, i32) {
    %c0_i32 = arith.constant 0 : i32
    %c0_i32_0 = arith.constant 0 : i32
    %c0_i32_1 = arith.constant 0 : i32
    return %c0_i32, %c0_i32_0 : i32, i32
  }
}

</mosaic_0001>

<bundles_post_ra>
// kernel: net_forward.1
= control target key start
LH: loop header
LB: loop body
LE: loop exit
PB: predicated region body
PF: predicated region fallthrough
CT: control target
= control target key end

     0   :  { %s2807_s12 = smov 96   ;;  %s2808_s25 = smov 64   ;;  %s4011_s0 = inlined_call_operand.vmem [shape: f32[4,24,96], index: 0, kind: input, shape index: {}]   ;;  %s4012_s1 = inlined_call_operand.vmem [shape: bf16[480,168], index: 1, kind: input, shape index: {}]   ;;  %s4013_s2 = inlined_call_operand.vmem [shape: f32[1,168], index: 2, kind: input, shape index: {}]   ;;  %s4014_s3 = inlined_call_operand.vmem [shape: bf16[420,160], index: 3, kind: input, shape index: {}]   ;;  %s4015_s4 = inlined_call_operand.vmem [shape: f32[1,160], index: 4, kind: input, shape index: {}]   ;;  %s4016_s5 = inlined_call_operand.vmem [shape: bf16[80,600], index: 5, kind: input, shape index: {}]   ;;  %s4017_s6 = inlined_call_operand.vmem [shape: f32[1,120], index: 6, kind: input, shape index: {}]   ;;  %s4018_s7 = inlined_call_operand.vmem [shape: bf16[120,84], index: 7, kind: input, shape index: {}]   ;;  %s4019_s8 = inlined_call_operand.vmem [shape: f32[1,84], index: 8, kind: input, shape index: {}]   ;;  %s4020_s9 = inlined_call_operand.vmem [shape: bf16[84,10], index: 9, kind: input, shape index: {}]   ;;  %s4021_s10 = inlined_call_operand.vmem [shape: f32[1,10], index: 10, kind: input, shape index: {}]   ;;  %s4022_s11 = inlined_call_operand.hbm [shape: f32[2,10], index: 11, kind: output, shape index: {}]  }
   0x1   :  { %v2886_v0 = vld [vmem:[%s4011_s0 + $0x18] sm:$0xff]  ;;  %v2891_v1 = vld [vmem:[%s4011_s0 + $0x20] sm:$0xff]  ;;  %v2896_v2 = vld [vmem:[%s4011_s0 + $0x30] sm:$0xff]  ;;  %s2809_s24 = smov 32  }
   0x2   :  { %v2404_v3 = vpack.i.bf16 %v2891_v1, %v2886_v0  ;;  %v2903_v4 = vld [vmem:[%s4011_s0 + $0x38] sm:$0xff]  ;;  %v2908_v5 = vld [vmem:[%s4011_s0 + $0x1] sm:$0xff]  ;;  %v2918_v7 = vld [vmem:[%s4011_s0 + $0x50] sm:$0xff] }
   0x3   :  { %v2913_v6 = vld [vmem:[%s4011_s0 + $0x48] sm:$0xff]  ;;  %v2409_v8 = vpack.i.bf16 %v2903_v4, %v2896_v2  ;;  %v2932_v11 = vld [vmem:[%s4011_s0 + $0x31] sm:$0xff]  ;;  %v2937_v12 = vld [vmem:[%s4011_s0 + $0x39] sm:$0xff] }
   0x4   :  { %2405 = vrot.lane.b32.xlu0 %v2404_v3, %s2807_s12  ;;  %v2925_v9 = vld [vmem:[%s4011_s0 + $0x9] sm:$0xff]  ;;  %v2414_v10 = vpack.i.bf16 %v2918_v7, %v2913_v6  ;;  %v177_v13 = vpack.c.bf16 %v2937_v12, %v2932_v11  ;;  %v2567_v17 = vld [vmem:[%s4012_s1 + $0x14] ss:$8 sps:$4 sm:$0xff]   ;;  %v2966_v21 = vld [vmem:[%s4011_s0 + $0x21] sm:$0xff]  ;;  %v2459_v29 = vpack.i.bf16 %v2937_v12, %v2932_v11 }
   0x5   :  { %v2564_v14 = vld [vmem:[%s4012_s1 + $0x4] ss:$8 sps:$4 sm:$0xff]   ;;  %v2419_v15 = vpack.i.bf16 %v2925_v9, %v2908_v5  ;;  %v2566_v16 = vld [vmem:[%s4012_s1] ss:$8 sps:$4 sm:$0xff]   ;;  %v2569_v18 = vld [vmem:[%s4012_s1 + $0x10] ss:$8 sps:$4 sm:$0xff]   ;;  %v173_v47 = vpack.c.bf16 %v2925_v9, %v2908_v5 }
   0x6   :  { %2415 = vrot.lane.b32.xlu1 %v2414_v10, %s2807_s12  ;;  %570 = vmatprep.subr.bf16.mxu0 %v2564_v14  ;;  %v2570_v19 = vld [vmem:[%s4012_s1 + $0x24] ss:$8 sps:$4 sm:$0xff]   ;;  %v2961_v20 = vld [vmem:[%s4011_s0 + $0x19] sm:$0xff] }
   0x7   :  { %571 = vmatpush1.bf16.msra.mxu0 %v2566_v16  ;;  %v2572_v22 = vld [vmem:[%s4012_s1 + $0x20] ss:$8 sps:$4 sm:$0xff]   ;;  %v2573_v23 = vld [vmem:[%s4012_s1 + $0x34] ss:$8 sps:$4 sm:$0xff]   ;;  %v2439_v24 = vpack.i.bf16 %v2966_v21, %v2961_v20  ;;  %v2575_v25 = vld [vmem:[%s4012_s1 + $0x30] ss:$8 sps:$4 sm:$0xff]   ;;  %v181_v53 = vpack.c.bf16 %v2966_v21, %v2961_v20 }
   0x8   :  { %2410 = vrot.lane.b32.xlu0 %v2409_v8, %s2808_s25  ;;  %572 = vmatprep.subr.bf16.mxu0 %v2567_v17  ;;  %v2576_v26 = vld [vmem:[%s4012_s1 + $0x44] ss:$8 sps:$4 sm:$0xff]   ;;  %v2578_v27 = vld [vmem:[%s4012_s1 + $0x40] ss:$8 sps:$4 sm:$0xff]   ;;  %v2579_v28 = vld [vmem:[%s4012_s1 + $0x54] ss:$8 sps:$4 sm:$0xff]  }
   0x9   :  { %v2581_v30 = vld [vmem:[%s4012_s1 + $0x50] ss:$8 sps:$4 sm:$0xff]   ;;  %v2582_v31 = vld [vmem:[%s4012_s1 + $0x64] ss:$8 sps:$4 sm:$0xff]   ;;  %v2584_v32 = vld [vmem:[%s4012_s1 + $0x60] ss:$8 sps:$4 sm:$0xff]  }
   0xa   :  { %2420 = vrot.lane.b32.xlu1 %v2419_v15, %s2808_s25  ;;  %v2585_v33 = vld [vmem:[%s4012_s1 + $0x74] ss:$8 sps:$4 sm:$0xff]   ;;  %v2587_v34 = vld [vmem:[%s4012_s1 + $0x70] ss:$8 sps:$4 sm:$0xff]   ;;  %v2588_v35 = vld [vmem:[%s4012_s1 + $0x84] ss:$8 sps:$4 sm:$0xff]  }
   0xb   :  { %573 = vmatpush1.bf16.msra.mxu0 %v2569_v18  ;;  %v2590_v36 = vld [vmem:[%s4012_s1 + $0x80] ss:$8 sps:$4 sm:$0xff]   ;;  %v2591_v37 = vld [vmem:[%s4012_s1 + $0x94] ss:$8 sps:$4 sm:$0xff]   ;;  %v2593_v38 = vld [vmem:[%s4012_s1 + $0x90] ss:$8 sps:$4 sm:$0xff]  }
   0xc   :  { %2425 = vrot.lane.b32.xlu0 %v2409_v8, %s2807_s12  ;;  %574 = vmatprep.subr.bf16.mxu0 %v2570_v19  ;;  %v2594_v39 = vld [vmem:[%s4012_s1 + $0xa4] ss:$8 sps:$4 sm:$0xff]   ;;  %v2596_v40 = vld [vmem:[%s4012_s1 + $0xa0] ss:$8 sps:$4 sm:$0xff]   ;;  %v2597_v41 = vld [vmem:[%s4012_s1 + $0xb4] ss:$8 sps:$4 sm:$0xff]  }
   0xd   :  { %v2599_v42 = vld [vmem:[%s4012_s1 + $0xb0] ss:$8 sps:$4 sm:$0xff]   ;;  %v2600_v43 = vld [vmem:[%s4012_s1 + $0xc4] ss:$8 sps:$4 sm:$0xff]   ;;  %v2602_v44 = vld [vmem:[%s4012_s1 + $0xc0] ss:$8 sps:$4 sm:$0xff]  }
   0xe   :  { %2430 = vrot.lane.b32.xlu1 %v2414_v10, %s2808_s25  ;;  %v2603_v45 = vld [vmem:[%s4012_s1 + $0xd4] ss:$8 sps:$4 sm:$0xff]   ;;  %v2605_v46 = vld [vmem:[%s4012_s1 + $0xd0] ss:$8 sps:$4 sm:$0xff]   ;;  %v2606_v48 = vld [vmem:[%s4012_s1 + $0xe4] ss:$8 sps:$4 sm:$0xff]  }
   0xf   :  { %575 = vmatpush1.bf16.msra.mxu0 %v2572_v22  ;;  %v2608_v49 = vld [vmem:[%s4012_s1 + $0xe0] ss:$8 sps:$4 sm:$0xff]   ;;  %v2609_v50 = vld [vmem:[%s4012_s1 + $0xf4] ss:$8 sps:$4 sm:$0xff]   ;;  %v2611_v51 = vld [vmem:[%s4012_s1 + $0xf0] ss:$8 sps:$4 sm:$0xff]  }
  0x10   :  { %2435 = vrot.lane.b32.xlu0 %v2419_v15, %s2807_s12  ;;  %576 = vmatprep.subr.bf16.mxu0 %v2573_v23  ;;  %v2614_v52 = vld [vmem:[%s4012_s1 + $0x104] ss:$8 sps:$4 sm:$0xff]  }
  0x12   :  { %2440 = vrot.lane.b32.xlu1 %v2439_v24, %s2808_s25 }
  0x13   :  { %577 = vmatpush1.bf16.msra.mxu0 %v2575_v25 }
  0x14   :  { %2445 = vrot.lane.b32.xlu0 %v2414_v10, %s2809_s24  ;;  %578 = vmatprep.subr.bf16.mxu0 %v2576_v26 }
  0x16   :  { %2450 = vrot.lane.b32.xlu1 %v2439_v24, %s2809_s24 }
  0x17   :  { %579 = vmatpush1.bf16.msra.mxu0 %v2578_v27 }
  0x18   :  { %2455 = vrot.lane.b32.xlu0 %v2419_v15, %s2809_s24  ;;  %580 = vmatprep.subr.bf16.mxu0 %v2579_v28 }
  0x1a   :  { %2460 = vrot.lane.b32.xlu1 %v2459_v29, %s2809_s24 }
  0x1b   :  { %581 = vmatpush1.bf16.msra.mxu0 %v2581_v30 }
  0x1c   :  { %582 = vmatprep.subr.bf16.mxu0 %v2582_v31 }
  0x1f   :  { %583 = vmatpush1.bf16.msra.mxu0 %v2584_v32 }
  0x20   :  { %584 = vmatprep.subr.bf16.mxu0 %v2585_v33 }
  0x23   :  { %585 = vmatpush1.bf16.msra.mxu0 %v2587_v34 }
  0x24   :  { %586 = vmatprep.subr.bf16.mxu0 %v2588_v35 }
  0x27   :  { %587 = vmatpush1.bf16.msra.mxu0 %v2590_v36 }
  0x28   :  { %588 = vmatprep.subr.bf16.mxu0 %v2591_v37 }
  0x2b   :  { %589 = vmatpush1.bf16.msra.mxu0 %v2593_v38 }
  0x2c   :  { %590 = vmatprep.subr.bf16.mxu0 %v2594_v39 }
  0x2f   :  { %591 = vmatpush1.bf16.msra.mxu0 %v2596_v40 }
  0x30   :  { %592 = vmatprep.subr.bf16.mxu0 %v2597_v41 }
  0x33   :  { %593 = vmatpush1.bf16.msra.mxu0 %v2599_v42 }
  0x34   :  { %594 = vmatprep.subr.bf16.mxu0 %v2600_v43 }
  0x37   :  { %595 = vmatpush1.bf16.msra.mxu0 %v2602_v44 }
  0x38   :  { %596 = vmatprep.subr.bf16.mxu0 %v2603_v45 }
  0x3b   :  { %597 = vmatpush1.bf16.msra.mxu0 %v2605_v46 }
  0x3c   :  { %598 = vmatprep.subr.bf16.mxu0 %v2606_v48 }
  0x3f   :  { %599 = vmatpush1.bf16.msra.mxu0 %v2608_v49 }
  0x40   :  { %600 = vmatprep.subr.bf16.mxu0 %v2609_v50 }
  0x43   :  { %601 = vmatpush1.bf16.msra.mxu0 %v2611_v51 }
  0x44   :  { %643 = vmatprep.subr.bf16.mxu0 %v2614_v52 }
  0x45   :  { %16 = vsyncpa [#allocation3], 0  ;;  %v40_v57 = vld [vmem:[%s4011_s0] sm:$0xff]  ;;  %v41_v58 = vld [vmem:[%s4011_s0 + $0x8] sm:$0xff]  ;;  %vm77_vm0 = vcmask 785408   ;;  %vm80_vm1 = vcmask 523264   ;;  %v248_v12 = vlaneseq }
  0x46   :  { %v2612_v23 = vld [vmem:[%s4012_s1 + $0x100] ss:$8 sps:$4 sm:$0xff]   ;;  %v2617_v27 = vld [vmem:[%s4012_s1 + $0x114] ss:$8 sps:$4 sm:$0xff]   ;;  %v2615_v35 = vld [vmem:[%s4012_s1 + $0x110] ss:$8 sps:$4 sm:$0xff]  }
  0x47   :  { %v2620_v38 = vld [vmem:[%s4012_s1 + $0x124] ss:$8 sps:$4 sm:$0xff]   ;;  %v2623_v49 = vld [vmem:[%s4012_s1 + $0x134] ss:$8 sps:$4 sm:$0xff]   ;;  %vm83_vm2 = vcmask 261120   ;;  %vm744_vm3 = vcmask 359424  }
  0x48   :  { %v2639_v5 = vld [vmem:[%s4012_s1 + $0x190] ss:$8 sps:$4 sm:$0xff]   ;;  %v2644_v9 = vld [vmem:[%s4012_s1 + $0x1a4] ss:$8 sps:$4 sm:$0xff]   ;;  %v246_v21 = vld [vmem:[%s4013_s2] sm:$0x3] }
  0x49   :  { %vm819_vm4 = vcmask 1046528   ;;  %vm838_vm5 = vcmask 1045504   ;;  %s2811_s28 = smov 40   ;;  %s2812_s30 = smov 80   ;;  %vm848_vm6 = vcmask 687104   ;;  %vm851_vm7 = vcmask 326656  }
  0x4a   :  { %s2813_s13 = smov 84   ;;  %s2814_s14 = smov 124   ;;  %vm854_vm8 = vcmask 1014784   ;;  %vm1194_vm9 = vcmask 293888   ;;  %vm857_vm10 = vcmask 654336   ;;  %vm1198_vm11 = vcmask 1041408  }
  0x4b   :  { %s2815_s26 = smov 48   ;;  %vm2818_vm12 = vmmov 0   ;;  %vm1439_vm13 = vcmask 392192   ;;  %vm1928_vm14 = vcmask 1043456   ;;  %vm1765_vm15 = vcmask 64512  }
  0x76   :  { %v2406_v54 = vpop.permute.xlu0 %2405 }
  0x77   :  { %v2408_v55 = vunpack.i.h.bf16 %v2406_v54  ;;  %v2407_v56 = vunpack.i.l.bf16 %v2406_v54 }
  0x78   :  { %v2416_v59 = vpop.permute.xlu1 %2415 }
  0x79   :  { %v78_v61 = vsel %vm77_vm0, %v40_v57, %v2407_v56  ;;  %v79_v62 = vsel %vm77_vm0, %v41_v58, %v2408_v55  ;;  %v2418_v8 = vunpack.i.h.bf16 %v2416_v59  ;;  %v2417_v10 = vunpack.i.l.bf16 %v2416_v59 }
  0x7a   :  { %v3070_v60 = vpop.permute.xlu0 %2410  ;;  %v170_v24 = vpack.c.bf16 %v79_v62, %v78_v61 }
  0x7b   :  { %v2413_v63 = vunpack.i.h.bf16 %v3070_v60  ;;  %v2412_v3 = vunpack.i.l.bf16 %v3070_v60  ;;  %v112_v36 = vsel %vm77_vm0, %v2896_v2, %v2417_v10  ;;  %v113_v37 = vsel %vm77_vm0, %v2903_v4, %v2418_v8  ;;  %v2618_v4 = vld [vmem:[%s4012_s1 + $0x120] ss:$8 sps:$4 sm:$0xff]  }
  0x7c   :  { %v2421_v14 = vpop.permute.xlu1 %2420  ;;  %v174_v43 = vpack.c.bf16 %v113_v37, %v112_v36  ;;  %v2636_v36 = vld [vmem:[%s4012_s1 + $0x180] ss:$8 sps:$4 sm:$0xff]   ;;  %v2641_v37 = vld [vmem:[%s4012_s1 + $0x194] ss:$8 sps:$4 sm:$0xff]  }
  0x7d   :  { %v81_v15 = vsel %vm80_vm1, %v2407_v56, %v2412_v3  ;;  %v82_v16 = vsel %vm80_vm1, %v2408_v55, %v2413_v63  ;;  %v2423_v17 = vunpack.i.h.bf16 %v2421_v14  ;;  %v2422_v18 = vunpack.i.l.bf16 %v2421_v14  ;;  %v2621_v56 = vld [vmem:[%s4012_s1 + $0x130] ss:$8 sps:$4 sm:$0xff]  }
  0x7e   :  { %v2426_v19 = vpop.permute.xlu0 %2425  ;;  %v171_v22 = vpack.c.bf16 %v82_v16, %v81_v15  ;;  %v2097_v60 = vld [vmem:[%s4011_s0 + $0x49] sm:$0xff] }
  0x7f   :  { %v2428_v25 = vunpack.i.h.bf16 %v2426_v19  ;;  %v2427_v26 = vunpack.i.l.bf16 %v2426_v19  ;;  %v114_v28 = vsel %vm80_vm1, %v2417_v10, %v2422_v18  ;;  %v115_v29 = vsel %vm80_vm1, %v2418_v8, %v2423_v17 }
  0x80   :  { %602 = vmatprep.mubr.bf16.mxu0 %v171_v22  ;;  %v2431_v30 = vpop.permute.xlu1 %2430  ;;  %v175_v31 = vpack.c.bf16 %v115_v29, %v114_v28  ;;  %v2627_v29 = vld [vmem:[%s4012_s1 + $0x150] ss:$8 sps:$4 sm:$0xff]  }
  0x81   :  { %603 = vmatmul.mubr.bf16.vlgmr.msra.gmra.mrb[0].mxu0 %v170_v24  ;;  %v2433_v32 = vunpack.i.h.bf16 %v2431_v30  ;;  %v2432_v33 = vunpack.i.l.bf16 %v2431_v30  ;;  %v136_v54 = vsel %vm77_vm0, %v2886_v0, %v2427_v26  ;;  %v137_v55 = vsel %vm77_vm0, %v2891_v1, %v2428_v25  ;;  %v2626_v0 = vld [vmem:[%s4012_s1 + $0x144] ss:$8 sps:$4 sm:$0xff]  }
  0x82   :  { %644 = vmatpush1.bf16.msra.mxu0 %v2612_v23  ;;  %v3090_v34 = vpop.permute.xlu0 %2435  ;;  %612 = vmatprep.mubr.bf16.mxu0 %v175_v31  ;;  %v178_v10 = vpack.c.bf16 %v137_v55, %v136_v54 }
  0x83   :  { %645 = vmatprep.subr.bf16.mxu0 %v2617_v27  ;;  %v138_v39 = vsel %vm80_vm1, %v2427_v26, %v2432_v33  ;;  %v139_v40 = vsel %vm80_vm1, %v2428_v25, %v2433_v32  ;;  %v2438_v42 = vunpack.i.h.bf16 %v3090_v34  ;;  %v2437_v44 = vunpack.i.l.bf16 %v3090_v34  ;;  %v2629_v25 = vld [vmem:[%s4012_s1 + $0x154] ss:$8 sps:$4 sm:$0xff]   ;;  %v2630_v34 = vld [vmem:[%s4012_s1 + $0x160] ss:$8 sps:$4 sm:$0xff]  }
  0x84   :  { %v2441_v41 = vpop.permute.xlu1 %2440  ;;  %v179_v48 = vpack.c.bf16 %v139_v40, %v138_v39  ;;  %v2645_v39 = vld [vmem:[%s4012_s1 + $0x1b0] ss:$8 sps:$4 sm:$0xff]   ;;  %v2650_v40 = vld [vmem:[%s4012_s1 + $0x1c4] ss:$8 sps:$4 sm:$0xff]  }
  0x85   :  { %v2443_v45 = vunpack.i.h.bf16 %v2441_v41  ;;  %v2442_v46 = vunpack.i.l.bf16 %v2441_v41  ;;  %v164_v30 = vsel %vm77_vm0, %v2913_v6, %v2437_v44  ;;  %v165_v31 = vsel %vm77_vm0, %v2918_v7, %v2438_v42  ;;  %v2633_v6 = vld [vmem:[%s4012_s1 + $0x170] ss:$8 sps:$4 sm:$0xff]   ;;  %v2638_v7 = vld [vmem:[%s4012_s1 + $0x184] ss:$8 sps:$4 sm:$0xff]   ;;  %v2648_v41 = vld [vmem:[%s4012_s1 + $0x1c0] ss:$8 sps:$4 sm:$0xff]  }
  0x86   :  { %646 = vmatpush1.bf16.msra.mxu0 %v2615_v35  ;;  %v3106_v2 = vpop.permute.xlu0 %2445  ;;  %v2635_v35 = vld [vmem:[%s4012_s1 + $0x174] ss:$8 sps:$4 sm:$0xff]  }
  0x87   :  { %647 = vmatprep.subr.bf16.mxu0 %v2620_v38  ;;  %v166_v58 = vsel %vm80_vm1, %v2437_v44, %v2442_v46  ;;  %v167_v59 = vsel %vm80_vm1, %v2438_v42, %v2443_v45  ;;  %v2647_v38 = vld [vmem:[%s4012_s1 + $0x1b4] ss:$8 sps:$4 sm:$0xff]   ;;  %v2447_v44 = vunpack.i.l.bf16 %v3106_v2  ;;  %vm1787_vm1 = vcmask 195584  }
  0x88   :  { %v2451_v50 = vpop.permute.xlu1 %2450  ;;  %v2653_v42 = vld [vmem:[%s4012_s1 + $0x1d4] ss:$8 sps:$4 sm:$0xff]  }
  0x89   :  { %v2453_v51 = vunpack.i.h.bf16 %v2451_v50  ;;  %v2452_v52 = vunpack.i.l.bf16 %v2451_v50  ;;  %613 = vmatmul.mubr.bf16.gmra.mrb[4].mxu0 %v174_v43  ;;  %v2448_v43 = vunpack.i.h.bf16 %v3106_v2 }
  0x8a   :  { %648 = vmatpush1.bf16.msra.mxu0 %v2618_v4  ;;  %v2456_v57 = vpop.permute.xlu0 %2455  ;;  %622 = vmatprep.mubr.bf16.mxu0 %v179_v48  ;;  %v2651_v4 = vld [vmem:[%s4012_s1 + $0x1d0] ss:$8 sps:$4 sm:$0xff]  }
  0x8b   :  { %649 = vmatprep.subr.bf16.mxu0 %v2623_v49  ;;  %v2458_v61 = vunpack.i.h.bf16 %v2456_v57  ;;  %v2457_v62 = vunpack.i.l.bf16 %v2456_v57  ;;  %v3127_v1 = vsel %vm83_vm2, %v2422_v18, %v2452_v52  ;;  %v3130_v8 = vsel %vm83_vm2, %v2423_v17, %v2453_v51  ;;  %v2624_v18 = vld [vmem:[%s4012_s1 + $0x140] ss:$8 sps:$4 sm:$0xff]  }
  0x8c   :  { %v2461_v14 = vpop.permute.xlu1 %2460  ;;  %v176_v15 = vpack.c.bf16 %v3130_v8, %v3127_v1  ;;  %v183_v17 = vpack.c.bf16 %v167_v59, %v166_v58 }
  0x8d   :  { %v2463_v16 = vunpack.i.h.bf16 %v2461_v14  ;;  %v2462_v19 = vunpack.i.l.bf16 %v2461_v14  ;;  %v3135_v22 = vsel %vm83_vm2, %v2432_v33, %v2457_v62  ;;  %v3138_v23 = vsel %vm83_vm2, %v2433_v32, %v2458_v61  ;;  %v2632_v32 = vld [vmem:[%s4012_s1 + $0x164] ss:$8 sps:$4 sm:$0xff]  }
  0x8e   :  { %650 = vmatpush1.bf16.msra.mxu0 %v2621_v56  ;;  %v180_v24 = vpack.c.bf16 %v3138_v23, %v3135_v22  ;;  %v182_v33 = vpack.c.bf16 %v165_v31, %v164_v30 }
  0x8f   :  { %651 = vmatprep.subr.bf16.mxu0 %v2626_v0  ;;  %v168_v26 = vsel %vm83_vm2, %v2442_v46, %v2462_v19  ;;  %v169_v27 = vsel %vm83_vm2, %v2443_v45, %v2463_v16  ;;  %v84_v45 = vsel %vm83_vm2, %v2412_v3, %v2447_v44  ;;  %v85_v46 = vsel %vm83_vm2, %v2413_v63, %v2448_v43  ;;  %v2098_v63 = vld [vmem:[%s4011_s0 + $0x51] sm:$0xff]  ;;  %s2810_s0 = smov 44  }
  0x90   :  { %v184_v28 = vpack.c.bf16 %v169_v27, %v168_v26  ;;  %v172_v48 = vpack.c.bf16 %v85_v46, %v84_v45  ;;  %v185_v11 = vpack.c.bf16 %v2098_v63, %v2097_v60 }
  0x91   :  { %623 = vmatmul.mubr.bf16.gmra.mrb[8].mxu0 %v178_v10 }
  0x92   :  { %652 = vmatpush1.bf16.msra.mxu0 %v2624_v18  ;;  %632 = vmatprep.mubr.bf16.mxu0 %v183_v17 }
  0x93   :  { %653 = vmatprep.subr.bf16.mxu0 %v2629_v25 }
  0x96   :  { %654 = vmatpush1.bf16.msra.mxu0 %v2627_v29 }
  0x97   :  { %655 = vmatprep.subr.bf16.mxu0 %v2632_v32 }
  0x99   :  { %633 = vmatmul.mubr.bf16.gmra.mrb[12].mxu0 %v182_v33 }
  0x9a   :  { %656 = vmatpush1.bf16.msra.mxu0 %v2630_v34  ;;  %2159 = vmatprep.mubr.msk.bf16.mxu0 %vm77_vm0, %v173_v47  ;;  %v2642_v47 = vld [vmem:[%s4012_s1 + $0x1a0] ss:$8 sps:$4 sm:$0xff]  }
  0x9b   :  { %657 = vmatprep.subr.bf16.mxu0 %v2635_v35 }
  0x9e   :  { %658 = vmatpush1.bf16.msra.mxu0 %v2633_v6 }
  0x9f   :  { %659 = vmatprep.subr.bf16.mxu0 %v2638_v7 }
  0xa2   :  { %660 = vmatpush1.bf16.msra.mxu0 %v2636_v36 }
  0xa3   :  { %661 = vmatprep.subr.bf16.mxu0 %v2641_v37 }
  0xa6   :  { %662 = vmatpush1.bf16.msra.mxu0 %v2639_v5 }
  0xa7   :  { %663 = vmatprep.subr.bf16.mxu0 %v2644_v9 }
  0xaa   :  { %664 = vmatpush1.bf16.msra.mxu0 %v2642_v47 }
  0xab   :  { %665 = vmatprep.subr.bf16.mxu0 %v2647_v38 }
  0xae   :  { %666 = vmatpush1.bf16.msra.mxu0 %v2645_v39 }
  0xaf   :  { %667 = vmatprep.subr.bf16.mxu0 %v2650_v40 }
  0xb2   :  { %668 = vmatpush1.bf16.msra.mxu0 %v2648_v41 }
  0xb3   :  { %669 = vmatprep.subr.bf16.mxu0 %v2653_v42 }
  0xb6   :  { %670 = vmatpush1.bf16.msra.mxu0 %v2651_v4 }
  0xb9   :  { %676 = vmatmul.mubr.bf16.vlgmr.msra.gmra.mrb[0].mxu0 %v172_v48 }
  0xba   :  { %2160 = vmatprep.mubr.msk.bf16.mxu0 %vm77_vm0, %v177_v13  ;;  %v3235_v13 = vshrl.u32 %v248_v12, 7  ;;  %v3302_v12 = vld [vmem:[%s4014_s3] ss:$8 sps:$4 sm:$0xff]  }
  0xbc   :  { %4049 = vst [vmem:[#allocation5_spill] sm:$0xff] %v3235_v13  ;;  %v4024_v20 = vsub.s32 0, %v3235_v13 }
  0xbe   :  { %v251_v3 = vrot.slane %v246_v21, %v4024_v20  ;;  %v3643_v20 = vld [vmem:[%s4014_s3 + $0x140] ss:$8 sps:$4 sm:$0xff]  }
  0xbf   :  { %4052 = vst [vmem:[#allocation8_spill] sm:$0xff] %v3643_v20 }
  0xc1   :  { %686 = vmatmul.mubr.bf16.gmra.mrb[4].mxu0 %v176_v15 }
  0xc2   :  { %2161 = vmatprep.mubr.msk.bf16.mxu0 %vm77_vm0, %v181_v53  ;;  %v4023_v53 = vsub.s32 1, %v3235_v13  ;;  %v3706_v13 = vld [vmem:[%s4014_s3 + $0x190] ss:$8 sps:$4 sm:$0xff]  }
  0xc3   :  { %4062 = vst [vmem:[#allocation18_spill] sm:$0xff] %v3706_v13 }
  0xc4   :  { %v255_v2 = vrot.slane %v246_v21, %v4023_v53  ;;  %v3307_v21 = vld [vmem:[%s4014_s3 + $0x14] ss:$8 sps:$4 sm:$0xff]   ;;  %v3637_v53 = vld [vmem:[%s4014_s3 + $0x144] ss:$8 sps:$4 sm:$0xff]  }
  0xc9   :  { %696 = vmatmul.mubr.bf16.gmra.mrb[8].mxu0 %v180_v24 }
  0xca   :  { %2162 = vmatprep.mubr.msk.bf16.mxu0 %vm77_vm0, %v185_v11  ;;  %v3297_v11 = vld [vmem:[%s4014_s3 + $0x4] ss:$8 sps:$4 sm:$0xff]   ;;  %vm1776_vm0 = vcmask 130048  }
  0xcb   :  { %1205 = vmatprep.subr.bf16.mxu1 %v3297_v11 }
  0xcc   :  { %1206 = vmatpush1.bf16.msra.mxu1 %v3302_v12 }
  0xcd   :  { %1207 = vmatprep.subr.bf16.mxu1 %v3307_v21 }
  0xd1   :  { %706 = vmatmul.mubr.bf16.gmra.mrb[12].mxu0 %v184_v28 }
 0x18c   :  { %v677_v49 = vpop.f32.mrb[0].mxu0 }
 0x18d   :  { %v3246_v50 = vadd.f32 %v677_v49, %v251_v3  ;;  %v679_v51 = vpop.f32.mrb[1].mxu0  ;;  %v3326_v49 = vld [vmem:[%s4014_s3 + $0x20] ss:$8 sps:$4 sm:$0xff]  }
 0x18e   :  { %v2341_v52 = vadd.f32 %v679_v51, %v255_v2  ;;  %v681_v54 = vpop.f32.mrb[2].mxu0  ;;  %v3332_v51 = vld [vmem:[%s4014_s3 + $0x34] ss:$8 sps:$4 sm:$0xff]  }
 0x18f   :  { %v716_v55 = vmax.f32 %v3246_v50, 0.0  ;;  %v3249_v56 = vadd.f32 %v681_v54, %v251_v3  ;;  %v683_v57 = vpop.f32.mrb[3].mxu0  ;;  %v3344_v54 = vld [vmem:[%s4014_s3 + $0x44] ss:$8 sps:$4 sm:$0xff]  }
 0x190   :  { %v717_v58 = vmax.f32 %v2341_v52, 0.0  ;;  %v2343_v59 = vadd.f32 %v683_v57, %v255_v2  ;;  %v3338_v52 = vld [vmem:[%s4014_s3 + $0x30] ss:$8 sps:$4 sm:$0xff]   ;;  %v3350_v57 = vld [vmem:[%s4014_s3 + $0x40] ss:$8 sps:$4 sm:$0xff]  }
 0x191   :  { %v718_v0 = vmax.f32 %v3249_v56, 0.0  ;;  %v3486_v56 = vld [vmem:[%s4014_s3 + $0xe0] ss:$8 sps:$4 sm:$0xff]  }
 0x192   :  { %v2464_v61 = vpack.i.bf16 %v717_v58, %v716_v55  ;;  %v719_v62 = vmax.f32 %v2343_v59, 0.0  ;;  %v3356_v58 = vld [vmem:[%s4014_s3 + $0x54] ss:$8 sps:$4 sm:$0xff]   ;;  %v3362_v59 = vld [vmem:[%s4014_s3 + $0x50] ss:$8 sps:$4 sm:$0xff]  }
 0x194   :  { %v2469_v1 = vpack.i.bf16 %v719_v62, %v718_v0  ;;  %v687_v8 = vpop.f32.mrb[4].mxu0  ;;  %2465 = vrot.lane.b32.xlu0 %v2464_v61, %s2810_s0  ;;  %v3368_v61 = vld [vmem:[%s4014_s3 + $0x64] ss:$8 sps:$4 sm:$0xff]   ;;  %v3374_v62 = vld [vmem:[%s4014_s3 + $0x60] ss:$8 sps:$4 sm:$0xff]  }
 0x195   :  { %v3257_v10 = vadd.f32 %v687_v8, %v251_v3  ;;  %v689_v14 = vpop.f32.mrb[5].mxu0  ;;  %v3386_v8 = vld [vmem:[%s4014_s3 + $0x70] ss:$8 sps:$4 sm:$0xff]  }
 0x196   :  { %v2345_v15 = vadd.f32 %v689_v14, %v255_v2  ;;  %v691_v16 = vpop.f32.mrb[6].mxu0  ;;  %2470 = vrot.lane.b32.xlu1 %v2469_v1, %s2810_s0  ;;  %v3380_v1 = vld [vmem:[%s4014_s3 + $0x74] ss:$8 sps:$4 sm:$0xff]   ;;  %v3392_v14 = vld [vmem:[%s4014_s3 + $0x84] ss:$8 sps:$4 sm:$0xff]  }
 0x197   :  { %v720_v19 = vmax.f32 %v3257_v10, 0.0  ;;  %v3261_v22 = vadd.f32 %v691_v16, %v251_v3  ;;  %v693_v23 = vpop.f32.mrb[7].mxu0  ;;  %v3404_v16 = vld [vmem:[%s4014_s3 + $0x94] ss:$8 sps:$4 sm:$0xff]  }
 0x198   :  { %v721_v18 = vmax.f32 %v2345_v15, 0.0  ;;  %v2347_v17 = vadd.f32 %v693_v23, %v255_v2  ;;  %v3398_v15 = vld [vmem:[%s4014_s3 + $0x80] ss:$8 sps:$4 sm:$0xff]   ;;  %v3410_v23 = vld [vmem:[%s4014_s3 + $0x90] ss:$8 sps:$4 sm:$0xff]  }
 0x199   :  { %v722_v24 = vmax.f32 %v3261_v22, 0.0 }
 0x19a   :  { %v2474_v25 = vpack.i.bf16 %v721_v18, %v720_v19  ;;  %v723_v26 = vmax.f32 %v2347_v17, 0.0  ;;  %v3416_v18 = vld [vmem:[%s4014_s3 + $0xa4] ss:$8 sps:$4 sm:$0xff]   ;;  %v3422_v17 = vld [vmem:[%s4014_s3 + $0xa0] ss:$8 sps:$4 sm:$0xff]  }
 0x19c   :  { %v2479_v27 = vpack.i.bf16 %v723_v26, %v722_v24  ;;  %v697_v28 = vpop.f32.mrb[8].mxu0  ;;  %2475 = vrot.lane.b32.xlu0 %v2474_v25, %s2810_s0  ;;  %v3428_v25 = vld [vmem:[%s4014_s3 + $0xb4] ss:$8 sps:$4 sm:$0xff]   ;;  %v3434_v26 = vld [vmem:[%s4014_s3 + $0xb0] ss:$8 sps:$4 sm:$0xff]  }
 0x19d   :  { %v3269_v29 = vadd.f32 %v697_v28, %v251_v3  ;;  %v699_v30 = vpop.f32.mrb[9].mxu0  ;;  %v3446_v28 = vld [vmem:[%s4014_s3 + $0xc0] ss:$8 sps:$4 sm:$0xff]  }
 0x19e   :  { %v2349_v31 = vadd.f32 %v699_v30, %v255_v2  ;;  %v701_v32 = vpop.f32.mrb[10].mxu0  ;;  %2480 = vrot.lane.b32.xlu1 %v2479_v27, %s2810_s0  ;;  %v3440_v27 = vld [vmem:[%s4014_s3 + $0xc4] ss:$8 sps:$4 sm:$0xff]  }
 0x19f   :  { %v724_v33 = vmax.f32 %v3269_v29, 0.0  ;;  %v3273_v34 = vadd.f32 %v701_v32, %v251_v3  ;;  %v703_v35 = vpop.f32.mrb[11].mxu0  ;;  %v3479_v29 = vld [vmem:[%s4014_s3 + $0xe4] ss:$8 sps:$4 sm:$0xff]  }
 0x1a0   :  { %v725_v6 = vmax.f32 %v2349_v31, 0.0  ;;  %v2351_v7 = vadd.f32 %v703_v35, %v255_v2 }
 0x1a1   :  { %v726_v36 = vmax.f32 %v3273_v34, 0.0 }
 0x1a2   :  { %v2484_v37 = vpack.i.bf16 %v725_v6, %v724_v33  ;;  %v727_v5 = vmax.f32 %v2351_v7, 0.0 }
 0x1a4   :  { %v2489_v9 = vpack.i.bf16 %v727_v5, %v726_v36  ;;  %v707_v47 = vpop.f32.mrb[12].mxu0  ;;  %2485 = vrot.lane.b32.xlu0 %v2484_v37, %s2810_s0 }
 0x1a5   :  { %v3281_v38 = vadd.f32 %v707_v47, %v251_v3  ;;  %v709_v39 = vpop.f32.mrb[13].mxu0 }
 0x1a6   :  { %v2353_v40 = vadd.f32 %v709_v39, %v255_v2  ;;  %v711_v41 = vpop.f32.mrb[14].mxu0  ;;  %2490 = vrot.lane.b32.xlu1 %v2489_v9, %s2810_s0 }
 0x1a7   :  { %v728_v42 = vmax.f32 %v3281_v38, 0.0  ;;  %v3285_v43 = vadd.f32 %v711_v41, %v251_v3  ;;  %v713_v44 = vpop.f32.mrb[15].mxu0  ;;  %v3314_v3 = vld [vmem:[%s4014_s3 + $0x10] ss:$8 sps:$4 sm:$0xff]  }
 0x1a8   :  { %v729_v4 = vmax.f32 %v2353_v40, 0.0  ;;  %v2355_v45 = vadd.f32 %v713_v44, %v255_v2  ;;  %v3320_v2 = vld [vmem:[%s4014_s3 + $0x24] ss:$8 sps:$4 sm:$0xff]   ;;  %1208 = vmatpush1.bf16.msra.mxu1 %v3314_v3  ;;  %v3454_v44 = vld [vmem:[%s4014_s3 + $0xd4] ss:$8 sps:$4 sm:$0xff]  }
 0x1a9   :  { %v730_v46 = vmax.f32 %v3285_v43, 0.0  ;;  %1209 = vmatprep.subr.bf16.mxu1 %v3320_v2 }
 0x1aa   :  { %v2494_v48 = vpack.i.bf16 %v729_v4, %v728_v42  ;;  %v731_v60 = vmax.f32 %v2355_v45, 0.0  ;;  %v3459_v4 = vld [vmem:[%s4014_s3 + $0xd0] ss:$8 sps:$4 sm:$0xff]  }
 0x1ac   :  { %v2499_v63 = vpack.i.bf16 %v731_v60, %v730_v46  ;;  %2495 = vrot.lane.b32.xlu0 %v2494_v48, %s2810_s0  ;;  %1210 = vmatpush1.bf16.msra.mxu1 %v3326_v49 }
 0x1ad   :  { %1211 = vmatprep.subr.bf16.mxu1 %v3332_v51 }
 0x1ae   :  { %2500 = vrot.lane.b32.xlu1 %v2499_v63, %s2810_s0 }
 0x1b0   :  { %1212 = vmatpush1.bf16.msra.mxu1 %v3338_v52 }
 0x1b1   :  { %1213 = vmatprep.subr.bf16.mxu1 %v3344_v54 }
 0x1b4   :  { %1214 = vmatpush1.bf16.msra.mxu1 %v3350_v57 }
 0x1b5   :  { %1215 = vmatprep.subr.bf16.mxu1 %v3356_v58 }
 0x1b8   :  { %1216 = vmatpush1.bf16.msra.mxu1 %v3362_v59 }
 0x1b9   :  { %1217 = vmatprep.subr.bf16.mxu1 %v3368_v61 }
 0x1bc   :  { %1218 = vmatpush1.bf16.msra.mxu1 %v3374_v62 }
 0x1bd   :  { %1219 = vmatprep.subr.bf16.mxu1 %v3380_v1 }
 0x1c0   :  { %1220 = vmatpush1.bf16.msra.mxu1 %v3386_v8 }
 0x1c1   :  { %1221 = vmatprep.subr.bf16.mxu1 %v3392_v14 }
 0x1c4   :  { %1222 = vmatpush1.bf16.msra.mxu1 %v3398_v15 }
 0x1c5   :  { %1223 = vmatprep.subr.bf16.mxu1 %v3404_v16 }
 0x1c8   :  { %1224 = vmatpush1.bf16.msra.mxu1 %v3410_v23 }
 0x1c9   :  { %1225 = vmatprep.subr.bf16.mxu1 %v3416_v18 }
 0x1cc   :  { %1226 = vmatpush1.bf16.msra.mxu1 %v3422_v17 }
 0x1cd   :  { %1227 = vmatprep.subr.bf16.mxu1 %v3428_v25 }
 0x1d0   :  { %1228 = vmatpush1.bf16.msra.mxu1 %v3434_v26 }
 0x1d1   :  { %1229 = vmatprep.subr.bf16.mxu1 %v3440_v27 }
 0x1d4   :  { %1230 = vmatpush1.bf16.msra.mxu1 %v3446_v28 }
 0x1d5   :  { %1231 = vmatprep.subr.bf16.mxu1 %v3454_v44 }
 0x1d8   :  { %1232 = vmatpush1.bf16.msra.mxu1 %v3459_v4 }
 0x1d9   :  { %1233 = vmatprep.subr.bf16.mxu1 %v3479_v29 }
 0x1dc   :  { %1234 = vmatpush1.bf16.msra.mxu1 %v3486_v56 }
 0x206   :  { %v2466_v30 = vpop.permute.xlu0 %2465 }
 0x207   :  { %v2468_v35 = vunpack.i.h.bf16 %v2466_v30  ;;  %v2467_v6 = vunpack.i.l.bf16 %v2466_v30 }
 0x208   :  { %v2471_v31 = vpop.permute.xlu1 %2470 }
 0x209   :  { %v2473_v37 = vunpack.i.h.bf16 %v2471_v31  ;;  %v2472_v5 = vunpack.i.l.bf16 %v2471_v31  ;;  %v745_v47 = vsel %vm744_vm3, %v2467_v6, %v2468_v35 }
 0x20a   :  { %v749_v30 = vmax.f32 %v716_v55, %v745_v47 }
 0x20b   :  { %v746_v45 = vsel %vm744_vm3, %v2472_v5, %v2473_v37 }
 0x20c   :  { %v750_v37 = vmax.f32 %v718_v0, %v746_v45 }
 0x20e   :  { %v2476_v32 = vpop.permute.xlu0 %2475 }
 0x20f   :  { %v2478_v35 = vunpack.i.h.bf16 %v2476_v32  ;;  %v2477_v6 = vunpack.i.l.bf16 %v2476_v32 }
 0x210   :  { %v2481_v7 = vpop.permute.xlu1 %2480 }
 0x211   :  { %v2483_v55 = vunpack.i.h.bf16 %v2481_v7  ;;  %v2482_v47 = vunpack.i.l.bf16 %v2481_v7  ;;  %v783_v0 = vsel %vm744_vm3, %v2477_v6, %v2478_v35 }
 0x213   :  { %v784_v45 = vsel %vm744_vm3, %v2482_v47, %v2483_v55  ;;  %v3525_v47 = vld [vmem:[%s4014_s3 + $0x104] ss:$8 sps:$4 sm:$0xff]  }
 0x214   :  { %v788_v10 = vmax.f32 %v722_v24, %v784_v45 }
 0x216   :  { %v2486_v9 = vpop.permute.xlu0 %2485 }
 0x217   :  { %v2488_v39 = vunpack.i.h.bf16 %v2486_v9  ;;  %v2487_v40 = vunpack.i.l.bf16 %v2486_v9 }
 0x218   :  { %v2491_v41 = vpop.permute.xlu1 %2490 }
 0x219   :  { %v763_v48 = vsel %vm744_vm3, %v2487_v40, %v2488_v39  ;;  %v2493_v60 = vunpack.i.h.bf16 %v2491_v41  ;;  %v2492_v63 = vunpack.i.l.bf16 %v2491_v41 }
 0x21a   :  { %v767_v31 = vmax.f32 %v724_v33, %v763_v48 }
 0x21b   :  { %v764_v9 = vsel %vm744_vm3, %v2492_v63, %v2493_v60 }
 0x21c   :  { %v3472_v5 = vmax.f32 %v749_v30, %v767_v31  ;;  %v768_v50 = vmax.f32 %v726_v36, %v764_v9  ;;  %v3499_v30 = vld [vmem:[%s4014_s3 + $0xf4] ss:$8 sps:$4 sm:$0xff]   ;;  %v787_v31 = vmax.f32 %v720_v19, %v783_v0 }
 0x21d   :  { %1235 = vmatprep.subr.bf16.mxu1 %v3499_v30 }
 0x21e   :  { %v3481_v33 = vmax.f32 %v750_v37, %v768_v50  ;;  %v2496_v32 = vpop.permute.xlu0 %2495  ;;  %v820_v7 = vrot.slane %v3472_v5, 1  ;;  %v839_v9 = vrot.slane %v3472_v5, 2  ;;  %v3510_v37 = vld [vmem:[%s4014_s3 + $0xf0] ss:$8 sps:$4 sm:$0xff]  }
 0x21f   :  { %v2498_v39 = vunpack.i.h.bf16 %v2496_v32  ;;  %v2497_v34 = vunpack.i.l.bf16 %v2496_v32  ;;  %1236 = vmatpush1.bf16.msra.mxu1 %v3510_v37 }
 0x220   :  { %v2501_v36 = vpop.permute.xlu1 %2500  ;;  %v821_v40 = vrot.slane %v3481_v33, 1  ;;  %v840_v41 = vrot.slane %v3481_v33, 2  ;;  %1248 = vmatprep.subr.bf16.mxu1 %v3525_v47 }
 0x221   :  { %v801_v48 = vsel %vm744_vm3, %v2497_v34, %v2498_v39  ;;  %v2503_v60 = vunpack.i.h.bf16 %v2501_v36  ;;  %v2502_v63 = vunpack.i.l.bf16 %v2501_v36 }
 0x222   :  { %v805_v35 = vmax.f32 %v728_v42, %v801_v48  ;;  %v822_v6 = vsel %vm819_vm4, %v820_v7, %v821_v40  ;;  %v841_v42 = vsel %vm838_vm5, %v839_v9, %v840_v41 }
 0x223   :  { %v802_v50 = vsel %vm744_vm3, %v2502_v63, %v2503_v60  ;;  %v2504_v55 = vpack.i.bf16 %v821_v40, %v822_v6  ;;  %v2519_v0 = vpack.i.bf16 %v840_v41, %v841_v42  ;;  %vm1845_vm3 = vcmask 1040384  }
 0x224   :  { %v3516_v19 = vmax.f32 %v787_v31, %v805_v35  ;;  %v806_v38 = vmax.f32 %v730_v46, %v802_v50 }
 0x225   :  { %2505 = vrot.lane.b32.xlu1 %v2504_v55, %s2811_s28 }
 0x226   :  { %v808_v32 = vmax.f32 %v788_v10, %v806_v38  ;;  %v829_v24 = vrot.slane %v3516_v19, 1  ;;  %v1313_v34 = vrot.slane %v3516_v19, 2 }
 0x228   :  { %v2509_v22 = vpack.i.bf16 %v808_v32, %v3516_v19  ;;  %v830_v43 = vrot.slane %v808_v32, 1  ;;  %v1314_v46 = vrot.slane %v808_v32, 2 }
 0x229   :  { %2520 = vrot.lane.b32.xlu1 %v2519_v0, %s2812_s30 }
 0x22a   :  { %2510 = vrot.lane.b32.xlu0 %v2509_v22, %s2813_s13  ;;  %v831_v39 = vsel %vm819_vm4, %v829_v24, %v830_v43  ;;  %v1315_v7 = vsel %vm838_vm5, %v1313_v34, %v1314_v46  ;;  %vm1924_vm4 = vcmask 982016  }
 0x22b   :  { %v2529_v36 = vpack.i.bf16 %v830_v43, %v831_v39  ;;  %v2539_v40 = vpack.i.bf16 %v1314_v46, %v1315_v7 }
 0x22d   :  { %2530 = vrot.lane.b32.xlu1 %v2529_v36, %s2811_s28 }
 0x22e   :  { %2515 = vrot.lane.b32.xlu0 %v2529_v36, %s2814_s14  ;;  %v3560_v36 = vld [vmem:[%s4014_s3 + $0x100] ss:$8 sps:$4 sm:$0xff]  }
 0x231   :  { %2540 = vrot.lane.b32.xlu1 %v2539_v40, %s2812_s30  ;;  %v3567_v40 = vld [vmem:[%s4014_s3 + $0x114] ss:$8 sps:$4 sm:$0xff]  }
 0x232   :  { %2525 = vrot.lane.b32.xlu0 %v2504_v55, %s2813_s13 }
 0x236   :  { %2535 = vrot.lane.b32.xlu0 %v2519_v0, %s2814_s14 }
 0x297   :  { %v2506_v41 = vpop.permute.xlu1 %2505 }
 0x298   :  { %v2508_v31 = vunpack.i.h.bf16 %v2506_v41  ;;  %v2507_v35 = vunpack.i.l.bf16 %v2506_v41 }
 0x29b   :  { %v3533_v45 = vpop.permute.xlu1 %2520 }
 0x29c   :  { %v2511_v48 = vpop.permute.xlu0 %2510  ;;  %v4030_v50 = vunpack.i.h.bf16 %v3533_v45  ;;  %v4032_v55 = vunpack.i.l.bf16 %v3533_v45 }
 0x29d   :  { %v2513_v60 = vunpack.i.h.bf16 %v2511_v48  ;;  %v2512_v63 = vunpack.i.l.bf16 %v2511_v48 }
 0x29e   :  { %v863_v41 = vpack.c.bf16 %v4030_v50, %v4032_v55  ;;  %v3691_v50 = vld [vmem:[%s4014_s3 + $0x180] ss:$8 sps:$4 sm:$0xff]  }
 0x29f   :  { %v3535_v6 = vpop.permute.xlu1 %2530  ;;  %v852_v42 = vsel %vm851_vm7, %v2512_v63, %v2507_v35  ;;  %v853_v0 = vsel %vm851_vm7, %v2513_v60, %v2508_v31  ;;  %v849_v22 = vsel %vm848_vm6, %v3472_v5, %v2512_v63  ;;  %v850_v24 = vsel %vm848_vm6, %v3481_v33, %v2513_v60  ;;  %v3655_v31 = vld [vmem:[%s4014_s3 + $0x150] ss:$8 sps:$4 sm:$0xff]   ;;  %4060 = vst [vmem:[#allocation16_spill] sm:$0xff] %v3691_v50  ;;  %v916_v55 = vld [vmem:[%s4014_s3 + $0x1a0] sm:$0x33] }
 0x2a0   :  { %v3537_v9 = vpop.permute.xlu0 %2515  ;;  %v860_v7 = vpack.c.bf16 %v850_v24, %v849_v22  ;;  %v3601_v24 = vld [vmem:[%s4014_s3 + $0x124] ss:$8 sps:$4 sm:$0xff]   ;;  %4054 = vst [vmem:[#allocation10_spill] sm:$0xff] %v3655_v31 }
 0x2a1   :  { %v4029_v10 = vunpack.i.h.bf16 %v3537_v9  ;;  %v4031_v38 = vunpack.i.l.bf16 %v3537_v9 }
 0x2a3   :  { %v855_v43 = vsel %vm854_vm8, %v852_v42, %v4031_v38  ;;  %v856_v46 = vsel %vm854_vm8, %v853_v0, %v4029_v10  ;;  %v3573_v48 = vpop.permute.xlu1 %2540  ;;  %v3685_v10 = vld [vmem:[%s4014_s3 + $0x184] ss:$8 sps:$4 sm:$0xff]   ;;  %v3697_v38 = vld [vmem:[%s4014_s3 + $0x194] ss:$8 sps:$4 sm:$0xff]  }
 0x2a4   :  { %v3555_v39 = vpop.permute.xlu0 %2525  ;;  %v861_v34 = vpack.c.bf16 %v856_v46, %v855_v43  ;;  %v4025_v42 = vunpack.i.h.bf16 %v3573_v48  ;;  %v4026_v0 = vunpack.i.l.bf16 %v3573_v48  ;;  %4059 = vst [vmem:[#allocation15_spill] sm:$0xff] %v3685_v10  ;;  %4061 = vst [vmem:[#allocation17_spill] sm:$0xff] %v3697_v38 }
 0x2a5   :  { %v4027_v5 = vunpack.i.h.bf16 %v3555_v39  ;;  %v4028_v33 = vunpack.i.l.bf16 %v3555_v39 }
 0x2a6   :  { %1237 = vmatprep.mubr.bf16.mxu1 %v861_v34  ;;  %v3649_v34 = vld [vmem:[%s4014_s3 + $0x154] ss:$8 sps:$4 sm:$0xff]  }
 0x2a7   :  { %v3578_v60 = vsel %vm848_vm6, %v808_v32, %v4027_v5  ;;  %v3584_v63 = vsel %vm848_vm6, %v3516_v19, %v4028_v33  ;;  %1238 = vmatmul.mubr.bf16.vlgmr.msra.gmra.mrb[0].mxu1 %v860_v7  ;;  %v3593_v32 = vld [vmem:[%s4014_s3 + $0x110] ss:$8 sps:$4 sm:$0xff]   ;;  %v3619_v7 = vld [vmem:[%s4014_s3 + $0x120] ss:$8 sps:$4 sm:$0xff]   ;;  %4053 = vst [vmem:[#allocation9_spill] sm:$0xff] %v3649_v34 }
 0x2a8   :  { %1249 = vmatpush1.bf16.msra.mxu1 %v3560_v36  ;;  %v2536_v35 = vpop.permute.xlu0 %2535  ;;  %2218 = vmatprep.mubr.msk.bf16.mxu1 %vm1194_vm9, %v863_v41  ;;  %v3625_v41 = vld [vmem:[%s4014_s3 + $0x134] ss:$8 sps:$4 sm:$0xff]   ;;  %v3679_v33 = vld [vmem:[%s4014_s3 + $0x170] ss:$8 sps:$4 sm:$0xff]  }
 0x2a9   :  { %v2538_v19 = vunpack.i.h.bf16 %v2536_v35  ;;  %v2537_v22 = vunpack.i.l.bf16 %v2536_v35  ;;  %1250 = vmatprep.subr.bf16.mxu1 %v3567_v40  ;;  %v3631_v35 = vld [vmem:[%s4014_s3 + $0x130] ss:$8 sps:$4 sm:$0xff]   ;;  %v3673_v5 = vld [vmem:[%s4014_s3 + $0x174] ss:$8 sps:$4 sm:$0xff]   ;;  %4058 = vst [vmem:[#allocation14_spill] sm:$0xff] %v3679_v33 }
 0x2aa   :  { %4057 = vst [vmem:[#allocation13_spill] sm:$0xff] %v3673_v5 }
 0x2ab   :  { %v3606_v43 = vsel %vm857_vm10, %v2537_v22, %v4026_v0  ;;  %v3611_v46 = vsel %vm857_vm10, %v2538_v19, %v4025_v42  ;;  %v3661_v42 = vld [vmem:[%s4014_s3 + $0x164] ss:$8 sps:$4 sm:$0xff]   ;;  %v3667_v0 = vld [vmem:[%s4014_s3 + $0x160] ss:$8 sps:$4 sm:$0xff]  }
 0x2ac   :  { %4050 = vst [vmem:[#allocation6_spill] sm:$0xff] %v3606_v43  ;;  %4051 = vst [vmem:[#allocation7_spill] sm:$0xff] %v3611_v46  ;;  %1251 = vmatpush1.bf16.msra.mxu1 %v3593_v32  ;;  %v3709_v43 = vcombine.high %v916_v55, %v916_v55  ;;  %v2215_v46 = vcombine.low %v916_v55, %v916_v55  ;;  %v4066_v55 = vunpack.i.h.bf16 %v3533_v45 }
 0x2ad   :  { %1252 = vmatprep.subr.bf16.mxu1 %v3601_v24  ;;  %4055 = vst [vmem:[#allocation11_spill] sm:$0xff] %v3661_v42  ;;  %4056 = vst [vmem:[#allocation12_spill] sm:$0xff] %v3667_v0 }
 0x2ae   :  { %4063 = vst [vmem:[#allocation19_spill] sm:$0xff] %v3709_v43 }
 0x2b0   :  { %1253 = vmatpush1.bf16.msra.mxu1 %v3619_v7 }
 0x2b1   :  { %1254 = vmatprep.subr.bf16.mxu1 %v3625_v41 }
 0x2b4   :  { %1255 = vmatpush1.bf16.msra.mxu1 %v3631_v35 }
 0x2b5   :  { %1256 = vmatprep.subr.bf16.mxu1 %v3637_v53 }
 0x2b8   :  { %1257 = vmatpush1.bf16.msra.mxu1 %v3643_v20 }
 0x2b9   :  { %1258 = vmatprep.subr.bf16.mxu1 %v3649_v34 }
 0x2bc   :  { %1259 = vmatpush1.bf16.msra.mxu1 %v3655_v31 }
 0x2bd   :  { %1260 = vmatprep.subr.bf16.mxu1 %v3661_v42  ;;  %v4067_v42 = vunpack.i.h.bf16 %v3537_v9 }
 0x2c0   :  { %1261 = vmatpush1.bf16.msra.mxu1 %v3667_v0 }
 0x2c1   :  { %1262 = vmatprep.subr.bf16.mxu1 %v3673_v5  ;;  %v4064_v5 = vunpack.i.l.bf16 %v3533_v45 }
 0x2c4   :  { %1263 = vmatpush1.bf16.msra.mxu1 %v3679_v33  ;;  %v2532_v33 = vunpack.i.l.bf16 %v3535_v6 }
 0x2c5   :  { %1264 = vmatprep.subr.bf16.mxu1 %v3685_v10  ;;  %v2533_v10 = vunpack.i.h.bf16 %v3535_v6  ;;  %v859_v6 = vsel %vm857_vm10, %v4067_v42, %v4066_v55  ;;  %v2746_v42 = vld [vmem:[%s4016_s5 + $0xa0] ss:$20 sps:$4 sm:$0xff]  }
 0x2c8   :  { %1265 = vmatpush1.bf16.msra.mxu1 %v3691_v50  ;;  %v3717_v50 = vsel %vm1198_vm11, %v2215_v46, 0 }
 0x2c9   :  { %1266 = vmatprep.subr.bf16.mxu1 %v3697_v38  ;;  %v4065_v38 = vunpack.i.l.bf16 %v3537_v9  ;;  %v2737_v9 = vld [vmem:[%s4016_s5 + $0x28] ss:$20 sps:$4 sm:$0xff]  }
 0x2cb   :  { %v858_v0 = vsel %vm857_vm10, %v4065_v38, %v4064_v5 }
 0x2cc   :  { %1267 = vmatpush1.bf16.msra.mxu1 %v3706_v13  ;;  %v4068_v13 = vunpack.i.l.bf16 %v3555_v39  ;;  %v862_v38 = vpack.c.bf16 %v859_v6, %v858_v0 }
 0x2cd   :  { %2217 = vmatprep.subr.msk.bf16.mxu1 %vm1198_vm11, %v3709_v43  ;;  %v4069_v43 = vunpack.i.h.bf16 %v3555_v39  ;;  %v2742_v39 = vld [vmem:[%s4016_s5 + $0x54] ss:$20 sps:$4 sm:$0xff]  }
 0x2ce   :  { %v1324_v31 = vsel %vm851_vm7, %v4068_v13, %v2532_v33  ;;  %v4070_v13 = vunpack.i.l.bf16 %v3573_v48 }
 0x2cf   :  { %v1325_v46 = vsel %vm851_vm7, %v4069_v43, %v2533_v10  ;;  %v1326_v34 = vsel %vm854_vm8, %v1324_v31, %v2537_v22  ;;  %v2748_v31 = vld [vmem:[%s4016_s5 + $0xa4] ss:$20 sps:$4 sm:$0xff]  }
 0x2d0   :  { %v1327_v20 = vsel %vm854_vm8, %v1325_v46, %v2538_v19  ;;  %1269 = vmatpush1.bf16.msra.mxu1 %v3717_v50  ;;  %v2816_v46 = vmov 0  }
 0x2d1   :  { %1337 = vmatprep.subr.bf16.mxu1 %v3297_v11  ;;  %v1331_v45 = vpack.c.bf16 %v1327_v20, %v1326_v34  ;;  %v4071_v20 = vunpack.i.h.bf16 %v3573_v48  ;;  %1662 = vmatprep.mubr.bf16.mxu0 %v2816_v46 }
 0x2d3   :  { %1281 = vmatmul.mubr.bf16.vlgmr.msra.gmra.mrb[0].mxu1 %v862_v38  ;;  %v1333_v11 = vpack.c.bf16 %v4071_v20, %v4070_v13  ;;  %v2817_v20 = vmov 0.0  }
 0x2d4   :  { %1338 = vmatpush1.bf16.msra.mxu1 %v3302_v12  ;;  %1369 = vmatprep.mubr.bf16.mxu1 %v1331_v45  ;;  %v4072_v12 = vpack.c.bf16 %v3578_v60, %v3584_v63  ;;  %v2745_v60 = vld [vmem:[%s4016_s5 + $0x7c] ss:$20 sps:$4 sm:$0xff]   ;;  %v2743_v63 = vld [vmem:[%s4016_s5 + $0x78] ss:$20 sps:$4 sm:$0xff]  }
 0x2d5   :  { %1339 = vmatprep.subr.bf16.mxu1 %v3307_v21  ;;  %v4073_v21 = vld [vmem:[#allocation8_spill] sm:$0xff] }
 0x2d8   :  { %1340 = vmatpush1.bf16.msra.mxu1 %v3314_v3  ;;  %v4074_v3 = vld [vmem:[#allocation9_spill] sm:$0xff] }
 0x2d9   :  { %1341 = vmatprep.subr.bf16.mxu1 %v3320_v2  ;;  %v4075_v2 = vld [vmem:[#allocation10_spill] sm:$0xff] }
 0x2dc   :  { %1342 = vmatpush1.bf16.msra.mxu1 %v3326_v49  ;;  %v4076_v49 = vld [vmem:[#allocation11_spill] sm:$0xff] }
 0x2dd   :  { %1343 = vmatprep.subr.bf16.mxu1 %v3332_v51  ;;  %v4077_v51 = vld [vmem:[#allocation12_spill] sm:$0xff] }
 0x2e0   :  { %1344 = vmatpush1.bf16.msra.mxu1 %v3338_v52  ;;  %v4078_v52 = vld [vmem:[#allocation13_spill] sm:$0xff] }
 0x2e1   :  { %1345 = vmatprep.subr.bf16.mxu1 %v3344_v54  ;;  %v4079_v54 = vld [vmem:[#allocation14_spill] sm:$0xff] }
 0x2e4   :  { %1346 = vmatpush1.bf16.msra.mxu1 %v3350_v57  ;;  %v4080_v57 = vld [vmem:[#allocation15_spill] sm:$0xff] }
 0x2e5   :  { %1347 = vmatprep.subr.bf16.mxu1 %v3356_v58  ;;  %v4081_v58 = vld [vmem:[#allocation16_spill] sm:$0xff] }
 0x2e8   :  { %1348 = vmatpush1.bf16.msra.mxu1 %v3362_v59  ;;  %v4082_v59 = vld [vmem:[#allocation17_spill] sm:$0xff] }
 0x2e9   :  { %1349 = vmatprep.subr.bf16.mxu1 %v3368_v61  ;;  %v4084_v61 = vld [vmem:[#allocation19_spill] sm:$0xff] }
 0x2ec   :  { %1350 = vmatpush1.bf16.msra.mxu1 %v3374_v62  ;;  %v4085_v62 = vld [vmem:[#allocation7_spill] sm:$0xff] }
 0x2ed   :  { %1351 = vmatprep.subr.bf16.mxu1 %v3380_v1  ;;  %v4086_v1 = vld [vmem:[#allocation6_spill] sm:$0xff] }
 0x2f0   :  { %1352 = vmatpush1.bf16.msra.mxu1 %v3386_v8  ;;  %v4087_v8 = vpack.c.bf16 %v4085_v62, %v4086_v1 }
 0x2f1   :  { %1353 = vmatprep.subr.bf16.mxu1 %v3392_v14  ;;  %v917_v14 = vld [vmem:[%s4015_s4] sm:$0x3]  ;;  %s2819_s4 = smov 8  }
 0x2f4   :  { %1354 = vmatpush1.bf16.msra.mxu1 %v3398_v15  ;;  %v4088_v15 = vld [vmem:[#allocation5_spill] sm:$0xff] }
 0x2f5   :  { %1355 = vmatprep.subr.bf16.mxu1 %v3404_v16  ;;  %v4089_v16 = vsub.s32 0, %v4088_v15 }
 0x2f8   :  { %1356 = vmatpush1.bf16.msra.mxu1 %v3410_v23  ;;  %v922_v23 = vrot.slane %v917_v14, %v4089_v16 }
 0x2f9   :  { %1357 = vmatprep.subr.bf16.mxu1 %v3416_v18  ;;  %v4090_v18 = vsub.s32 1, %v4088_v15 }
 0x2fc   :  { %1358 = vmatpush1.bf16.msra.mxu1 %v3422_v17  ;;  %v926_v17 = vrot.slane %v917_v14, %v4090_v18 }
 0x2fd   :  { %1359 = vmatprep.subr.bf16.mxu1 %v3428_v25 }
 0x300   :  { %1360 = vmatpush1.bf16.msra.mxu1 %v3434_v26  ;;  %v2734_v26 = vld [vmem:[%s4016_s5] ss:$20 sps:$4 sm:$0xff]  }
 0x301   :  { %1361 = vmatprep.subr.bf16.mxu1 %v3440_v27  ;;  %v2736_v27 = vld [vmem:[%s4016_s5 + $0x4] ss:$20 sps:$4 sm:$0xff]  }
 0x302   :  { %1630 = vmatprep.subr.bf16.mxu0 %v2736_v27  ;;  %v2752_v27 = vld [vmem:[%s4016_s5 + $0x30] ss:$20 sps:$4 sm:$0xff]  }
 0x303   :  { %1631 = vmatpush1.bf16.msra.mxu0 %v2734_v26  ;;  %v2754_v26 = vld [vmem:[%s4016_s5 + $0x34] ss:$20 sps:$4 sm:$0xff]  }
 0x304   :  { %1362 = vmatpush1.bf16.msra.mxu1 %v3446_v28 }
 0x305   :  { %1363 = vmatprep.subr.bf16.mxu1 %v3454_v44 }
 0x308   :  { %1364 = vmatpush1.bf16.msra.mxu1 %v3459_v4  ;;  %v2739_v4 = vld [vmem:[%s4016_s5 + $0x2c] ss:$20 sps:$4 sm:$0xff]  }
 0x309   :  { %1365 = vmatprep.subr.bf16.mxu1 %v3479_v29  ;;  %1632 = vmatprep.subr.bf16.mxu0 %v2739_v4  ;;  %v2760_v4 = vld [vmem:[%s4016_s5 + $0x84] ss:$20 sps:$4 sm:$0xff]  }
 0x30a   :  { %1633 = vmatpush1.bf16.msra.mxu0 %v2737_v9  ;;  %v2766_v9 = vld [vmem:[%s4016_s5 + $0x60] ss:$20 sps:$4 sm:$0xff]  }
 0x30b   :  { %1634 = vmatprep.subr.bf16.mxu0 %v2742_v39 }
 0x30c   :  { %1366 = vmatpush1.bf16.msra.mxu1 %v3486_v56 }
 0x30d   :  { %1367 = vmatprep.subr.bf16.mxu1 %v3499_v30 }
 0x310   :  { %1368 = vmatpush1.bf16.msra.mxu1 %v3510_v37 }
 0x311   :  { %1380 = vmatprep.subr.bf16.mxu1 %v3525_v47 }
 0x313   :  { %1370 = vmatmul.mubr.bf16.vlgmr.msra.gmra.mrb[4].mxu1 %v4072_v12 }
 0x314   :  { %1381 = vmatpush1.bf16.msra.mxu1 %v3560_v36  ;;  %2220 = vmatprep.mubr.msk.bf16.mxu1 %vm1194_vm9, %v1333_v11 }
 0x315   :  { %1382 = vmatprep.subr.bf16.mxu1 %v3567_v40  ;;  %v2740_v40 = vld [vmem:[%s4016_s5 + $0x50] ss:$20 sps:$4 sm:$0xff]  }
 0x316   :  { %1635 = vmatpush1.bf16.msra.mxu0 %v2740_v40 }
 0x317   :  { %1636 = vmatprep.subr.bf16.mxu0 %v2745_v60 }
 0x318   :  { %1383 = vmatpush1.bf16.msra.mxu1 %v3593_v32 }
 0x319   :  { %1384 = vmatprep.subr.bf16.mxu1 %v3601_v24 }
 0x31a   :  { %1637 = vmatpush1.bf16.msra.mxu0 %v2743_v63 }
 0x31b   :  { %1638 = vmatprep.subr.bf16.mxu0 %v2748_v31 }
 0x31c   :  { %1385 = vmatpush1.bf16.msra.mxu1 %v3619_v7 }
 0x31d   :  { %1386 = vmatprep.subr.bf16.mxu1 %v3625_v41  ;;  %v2751_v41 = vld [vmem:[%s4016_s5 + $0xc] ss:$20 sps:$4 sm:$0xff]  }
 0x31e   :  { %1639 = vmatpush1.bf16.msra.mxu0 %v2746_v42  ;;  %v2769_v42 = vld [vmem:[%s4018_s7] sm:$0xff]  }
 0x31f   :  { %1673 = vmatprep.subr.bf16.mxu0 %v2751_v41 }
 0x320   :  { %1387 = vmatpush1.bf16.msra.mxu1 %v3631_v35 }
 0x321   :  { %1388 = vmatprep.subr.bf16.mxu1 %v3637_v53  ;;  %v4083_v53 = vld [vmem:[#allocation18_spill] sm:$0xff] }
 0x324   :  { %1389 = vmatpush1.bf16.msra.mxu1 %v4073_v21 }
 0x325   :  { %1390 = vmatprep.subr.bf16.mxu1 %v4074_v3 }
 0x328   :  { %1391 = vmatpush1.bf16.msra.mxu1 %v4075_v2 }
 0x329   :  { %1392 = vmatprep.subr.bf16.mxu1 %v4076_v49 }
 0x32c   :  { %1393 = vmatpush1.bf16.msra.mxu1 %v4077_v51 }
 0x32d   :  { %1394 = vmatprep.subr.bf16.mxu1 %v4078_v52 }
 0x330   :  { %1395 = vmatpush1.bf16.msra.mxu1 %v4079_v54 }
 0x331   :  { %1396 = vmatprep.subr.bf16.mxu1 %v4080_v57 }
 0x334   :  { %1397 = vmatpush1.bf16.msra.mxu1 %v4081_v58 }
 0x335   :  { %1398 = vmatprep.subr.bf16.mxu1 %v4082_v59 }
 0x338   :  { %1399 = vmatpush1.bf16.msra.mxu1 %v4083_v53 }
 0x339   :  { %2219 = vmatprep.subr.msk.bf16.mxu1 %vm1198_vm11, %v4084_v61 }
 0x33c   :  { %1401 = vmatpush1.bf16.msra.mxu1 %v3717_v50 }
 0x33d   :  { %2324 = vmatprep.subr.bf16.mxu1 %v2817_v20 }
 0x33f   :  { %1413 = vmatmul.mubr.bf16.vlgmr.msra.gmra.mrb[4].mxu1 %v4087_v8 }
 0x340   :  { %2336 = vmatprep.mubr.msk.bf16.mxu1 %vm2818_vm12, %v2817_v20 }
 0x3a6   :  { %v1282_v25 = vpop.f32.mrb[0].mxu1 }
 0x3a7   :  { %v3817_v28 = vadd.f32 %v1282_v25, %v922_v23  ;;  %v1284_v44 = vpop.f32.mrb[1].mxu1 }
 0x3a8   :  { %v2357_v29 = vadd.f32 %v1284_v44, %v926_v17  ;;  %v1286_v56 = vpop.f32.mrb[2].mxu1  ;;  %v2755_v44 = vld [vmem:[%s4016_s5 + $0x58] ss:$20 sps:$4 sm:$0xff]  }
 0x3a9   :  { %v1291_v30 = vmax.f32 %v3817_v28, 0.0  ;;  %v3823_v37 = vadd.f32 %v1286_v56, %v922_v23  ;;  %v1288_v47 = vpop.f32.mrb[3].mxu1  ;;  %v2757_v28 = vld [vmem:[%s4016_s5 + $0x5c] ss:$20 sps:$4 sm:$0xff]   ;;  %v2763_v56 = vld [vmem:[%s4016_s5 + $0xac] ss:$20 sps:$4 sm:$0xff]  }
 0x3aa   :  { %v1292_v50 = vmax.f32 %v2357_v29, 0.0  ;;  %v2359_v10 = vadd.f32 %v1288_v47, %v926_v17  ;;  %v2758_v29 = vld [vmem:[%s4016_s5 + $0x80] ss:$20 sps:$4 sm:$0xff]   ;;  %v2765_v47 = vld [vmem:[%s4016_s5 + $0x38] ss:$20 sps:$4 sm:$0xff]  }
 0x3ab   :  { %v1293_v36 = vmax.f32 %v3823_v37, 0.0  ;;  %v2764_v37 = vld [vmem:[%s4016_s5 + $0x10] ss:$20 sps:$4 sm:$0xff]  }
 0x3ac   :  { %v2544_v5 = vpack.i.bf16 %v1292_v50, %v1291_v30  ;;  %v1294_v33 = vmax.f32 %v2359_v10, 0.0  ;;  %v2767_v50 = vld [vmem:[%s4016_s5 + $0x88] ss:$20 sps:$4 sm:$0xff]   ;;  %v2768_v10 = vld [vmem:[%s4016_s5 + $0xb0] ss:$20 sps:$4 sm:$0xff]  }
 0x3ae   :  { %v2549_v48 = vpack.i.bf16 %v1294_v33, %v1293_v36  ;;  %2545 = vrot.lane.b32.xlu0 %v2544_v5, %s2815_s26 }
 0x3b0   :  { %2550 = vrot.lane.b32.xlu1 %v2549_v48, %s2815_s26 }
 0x412   :  { %v1414_v32 = vpop.f32.mrb[4].mxu1 }
 0x413   :  { %v2360_v0 = vadd.f32 %v1414_v32, %v922_v23  ;;  %v1416_v19 = vpop.f32.mrb[5].mxu1 }
 0x414   :  { %v2361_v22 = vadd.f32 %v1416_v19, %v926_v17  ;;  %v1418_v24 = vpop.f32.mrb[6].mxu1 }
 0x415   :  { %v1423_v43 = vmax.f32 %v2360_v0, 0.0  ;;  %v2362_v34 = vadd.f32 %v1418_v24, %v922_v23  ;;  %v1420_v7 = vpop.f32.mrb[7].mxu1  ;;  %v2770_v0 = vld [vmem:[%s4018_s7 + $0x8] sm:$0xff]  }
 0x416   :  { %v1424_v35 = vmax.f32 %v2361_v22, 0.0  ;;  %v2363_v55 = vadd.f32 %v1420_v7, %v926_v17  ;;  %v2749_v17 = vld [vmem:[%s4016_s5 + $0x8] ss:$20 sps:$4 sm:$0xff]  }
 0x417   :  { %v1425_v6 = vmax.f32 %v2362_v34, 0.0  ;;  %v2771_v34 = vld [vmem:[%s4018_s7 + $0x10] sm:$0xff]  }
 0x418   :  { %v2554_v38 = vpack.i.bf16 %v1424_v35, %v1423_v43  ;;  %v1426_v45 = vmax.f32 %v2363_v55, 0.0  ;;  %v2772_v35 = vld [vmem:[%s4018_s7 + $0x18] sm:$0xff]  }
 0x41a   :  { %v2559_v13 = vpack.i.bf16 %v1426_v45, %v1425_v6  ;;  %2555 = vrot.lane.b32.xlu0 %v2554_v38, %s2815_s26 }
 0x41c   :  { %2560 = vrot.lane.b32.xlu1 %v2559_v13, %s2815_s26  ;;  %s2821_s26 = smov 24  }
 0x420   :  { %v2546_v11 = vpop.permute.xlu0 %2545 }
 0x421   :  { %v2548_v21 = vunpack.i.h.bf16 %v2546_v11  ;;  %v2547_v3 = vunpack.i.l.bf16 %v2546_v11 }
 0x422   :  { %v2551_v12 = vpop.permute.xlu1 %2550 }
 0x423   :  { %v2553_v2 = vunpack.i.h.bf16 %v2551_v12  ;;  %v2552_v49 = vunpack.i.l.bf16 %v2551_v12  ;;  %v1440_v57 = vsel %vm1439_vm13, %v2547_v3, %v2548_v21  ;;  %v2774_v12 = vld [vmem:[%s4018_s7 + $0x28] sm:$0xff]   ;;  %v2775_v21 = vld [vmem:[%s4018_s7 + $0x30] sm:$0xff]  }
 0x424   :  { %v1444_v14 = vmax.f32 %v1291_v30, %v1440_v57  ;;  %v2761_v30 = vld [vmem:[%s4016_s5 + $0xa8] ss:$20 sps:$4 sm:$0xff]   ;;  %s2820_s5 = smov 16  }
 0x425   :  { %v1441_v59 = vsel %vm1439_vm13, %v2552_v49, %v2553_v2  ;;  %v2776_v2 = vld [vmem:[%s4018_s7 + $0x38] ss:$0 sps:$4 sm:$0xff]  }
 0x426   :  { %v1445_v15 = vmax.f32 %v1293_v36, %v1441_v59 }
 0x48c   :  { %v2556_v51 = vpop.permute.xlu0 %2555 }
 0x48d   :  { %v2558_v52 = vunpack.i.h.bf16 %v2556_v51  ;;  %v2557_v54 = vunpack.i.l.bf16 %v2556_v51 }
 0x48e   :  { %v2561_v58 = vpop.permute.xlu1 %2560 }
 0x48f   :  { %v1458_v53 = vsel %vm1439_vm13, %v2557_v54, %v2558_v52  ;;  %v2563_v61 = vunpack.i.h.bf16 %v2561_v58  ;;  %v2562_v62 = vunpack.i.l.bf16 %v2561_v58  ;;  %v1930_v52 = vsel %vm1928_vm14, %v2776_v2, 0  ;;  %v2777_v58 = vld [vmem:[%s4020_s9] sm:$0xff]  }
 0x490   :  { %v1462_v1 = vmax.f32 %v1423_v43, %v1458_v53  ;;  %2325 = vmatpush3.bf16.msra.mxu1 %v2777_v58  ;;  %v2778_v53 = vld [vmem:[%s4020_s9 + $0x8] sm:$0xff]  }
 0x491   :  { %v1459_v8 = vsel %vm1439_vm13, %v2562_v62, %v2563_v61  ;;  %2326 = vmatprep.subr.bf16.mxu1 %v2817_v20  ;;  %v2779_v61 = vld [vmem:[%s4020_s9 + $0x10] sm:$0xff]   ;;  %v2780_v62 = vld [vmem:[%s4020_s9 + $0x18] sm:$0xff]  }
 0x492   :  { %v1463_v16 = vmax.f32 %v1425_v6, %v1459_v8  ;;  %v1464_v23 = vmax.f32 %v1444_v14, %v1462_v1 }
 0x494   :  { %v1465_v18 = vmax.f32 %v1445_v15, %v1463_v16  ;;  %2327 = vmatpush3.bf16.msra.mxu1 %v2778_v53 }
 0x495   :  { %2328 = vmatprep.subr.bf16.mxu1 %v2817_v20 }
 0x496   :  { %v1466_v25 = vpack.c.bf16 %v1465_v18, %v1464_v23 }
 0x498   :  { %2246 = vmatmul.mubr.msk.bf16.vlgmr.msra.gmra.mrb[16].mxu0 %vm857_vm10, %v1466_v25  ;;  %2329 = vmatpush3.bf16.msra.mxu1 %v2779_v61 }
 0x499   :  { %1674 = vmatpush1.bf16.msra.mxu0 %v2749_v17  ;;  %1705 = vmatprep.mubr.bf16.mxu0 %v2816_v46  ;;  %v2773_v46 = vld [vmem:[%s4018_s7 + $0x20] sm:$0xff]  }
 0x49a   :  { %1675 = vmatprep.subr.bf16.mxu0 %v2754_v26  ;;  %2330 = vmatprep.subr.bf16.mxu1 %v2817_v20 }
 0x49c   :  { %2331 = vmatpush3.bf16.msra.mxu1 %v2780_v62 }
 0x49d   :  { %1676 = vmatpush1.bf16.msra.mxu0 %v2752_v27  ;;  %2332 = vmatprep.subr.bf16.mxu1 %v2817_v20 }
 0x49e   :  { %1677 = vmatprep.subr.bf16.mxu0 %v2757_v28 }
 0x4a1   :  { %1678 = vmatpush1.bf16.msra.mxu0 %v2755_v44 }
 0x4a2   :  { %1679 = vmatprep.subr.bf16.mxu0 %v2760_v4 }
 0x4a5   :  { %1680 = vmatpush1.bf16.msra.mxu0 %v2758_v29 }
 0x4a6   :  { %1681 = vmatprep.subr.bf16.mxu0 %v2763_v56 }
 0x4a9   :  { %1682 = vmatpush1.bf16.msra.mxu0 %v2761_v30 }
 0x4aa   :  { %2290 = vmatprep.subr.bf16.mxu0 %v2817_v20 }
 0x4ac   :  { %2247 = vmatmul.mubr.msk.bf16.vlgmr.msra.gmra.mrb[20].mxu0 %vm857_vm10, %v1466_v25 }
 0x4ad   :  { %2291 = vmatpush3.bf16.msra.mxu0 %v2764_v37  ;;  %2300 = vmatprep.mubr.msk.bf16.mxu0 %vm2818_vm12, %v2817_v20 }
 0x4ae   :  { %2292 = vmatprep.subr.bf16.mxu0 %v2817_v20 }
 0x4b1   :  { %2293 = vmatpush3.bf16.msra.mxu0 %v2765_v47 }
 0x4b2   :  { %2294 = vmatprep.subr.bf16.mxu0 %v2817_v20 }
 0x4b5   :  { %2295 = vmatpush3.bf16.msra.mxu0 %v2766_v9 }
 0x4b6   :  { %2296 = vmatprep.subr.bf16.mxu0 %v2817_v20 }
 0x4b9   :  { %2297 = vmatpush3.bf16.msra.mxu0 %v2767_v50 }
 0x4ba   :  { %2298 = vmatprep.subr.bf16.mxu0 %v2817_v20 }
 0x4bd   :  { %2299 = vmatpush3.bf16.msra.mxu0 %v2768_v10 }
 0x4be   :  { %2304 = vmatprep.subr.bf16.mxu0 %v2817_v20 }
 0x4c0   :  { %2301 = vmatmul.mubr.msk.bf16.vlgmr.msra.gmra.mrb[24].mxu0 %vm857_vm10, %v1466_v25 }
 0x4c1   :  { %2320 = vmatprep.mubr.msk.bf16.mxu0 %vm2818_vm12, %v2817_v20  ;;  %2305 = vmatpush3.bf16.msra.mxu0 %v2769_v42 }
 0x4c2   :  { %2306 = vmatprep.subr.bf16.mxu0 %v2817_v20 }
 0x4c5   :  { %2307 = vmatpush3.bf16.msra.mxu0 %v2770_v0  ;;  %v2249_v0 = vld [vmem:[%s4017_s6] ss:$0 sm:$0xff] }
 0x4c6   :  { %2308 = vmatprep.subr.bf16.mxu0 %v2817_v20 }
 0x4c9   :  { %2309 = vmatpush3.bf16.msra.mxu0 %v2771_v34  ;;  %v2781_v34 = vld [vmem:[%s4020_s9 + $0x20] sm:$0xff]  }
 0x4ca   :  { %2310 = vmatprep.subr.bf16.mxu0 %v2817_v20  ;;  %2333 = vmatpush3.bf16.msra.mxu1 %v2781_v34 }
 0x4cb   :  { %2334 = vmatprep.subr.bf16.mxu1 %v2817_v20 }
 0x4cd   :  { %2311 = vmatpush3.bf16.msra.mxu0 %v2772_v35  ;;  %v2250_v35 = vld [vmem:[%s4019_s8] ss:$0 sm:$0xff] }
 0x4ce   :  { %2312 = vmatprep.subr.bf16.mxu0 %v2817_v20 }
 0x4d1   :  { %2313 = vmatpush3.bf16.msra.mxu0 %v2773_v46 }
 0x4d2   :  { %2314 = vmatprep.subr.bf16.mxu0 %v2817_v20 }
 0x4d5   :  { %2315 = vmatpush3.bf16.msra.mxu0 %v2774_v12 }
 0x4d6   :  { %2316 = vmatprep.subr.bf16.mxu0 %v2817_v20 }
 0x4d9   :  { %2317 = vmatpush3.bf16.msra.mxu0 %v2775_v21 }
 0x4da   :  { %2318 = vmatprep.subr.bf16.mxu0 %v2817_v20  ;;  %v2260_v20 = vld [vmem:[%s4021_s10] ss:$0 sm:$0xff] }
 0x4dd   :  { %2319 = vmatpush3.bf16.msra.mxu0 %v1930_v52 }
 0x56b   :  { %v3916_v39 = vpop.f32.mrb[16].mxu0 }
 0x56c   :  { %v1759_v36 = vrot.slane %v3916_v39, 1  ;;  %v1666_v5 = vpop.f32.mrb[17].mxu0 }
 0x56d   :  { %v1760_v33 = vrot.slane %v1666_v5, 1  ;;  %v3919_v40 = vpop.f32.mrb[18].mxu0  ;;  %v1770_v60 = vrot.slane %v1666_v5, 2 }
 0x56e   :  { %1761 = vrot.lane.b32.xlu0 %v1759_v36, %s2819_s4  ;;  %v1670_v48 = vpop.f32.mrb[19].mxu0  ;;  %v1803_v31 = vrot.slane %v3919_v40, 1 }
 0x56f   :  { %1763 = vrot.lane.b32.xlu1 %v1760_v33, %s2819_s4  ;;  %v1804_v63 = vrot.slane %v1670_v48, 1  ;;  %v1813_v32 = vrot.slane %v1670_v48, 2 }
 0x572   :  { %1772 = vrot.lane.b32.xlu0 %v1770_v60, %s2820_s5 }
 0x573   :  { %1807 = vrot.lane.b32.xlu1 %v1804_v63, %s2819_s4 }
 0x576   :  { %1805 = vrot.lane.b32.xlu0 %v1803_v31, %s2819_s4 }
 0x57a   :  { %1815 = vrot.lane.b32.xlu0 %v1813_v32, %s2820_s5 }
 0x57f   :  { %v1707_v19 = vpop.f32.mrb[20].mxu0 }
 0x580   :  { %v1771_v22 = vrot.slane %v1707_v19, 2  ;;  %v1781_v24 = vrot.slane %v1707_v19, 3  ;;  %v1709_v43 = vpop.f32.mrb[21].mxu0 }
 0x581   :  { %v1711_v7 = vpop.f32.mrb[22].mxu0  ;;  %v1782_v55 = vrot.slane %v1709_v43, 3  ;;  %v1792_v13 = vrot.slane %v1709_v43, 4 }
 0x582   :  { %1783 = vrot.lane.b32.xlu0 %v1781_v24, %s2821_s26  ;;  %1774 = vrot.lane.b32.xlu1 %v1771_v22, %s2820_s5  ;;  %v1713_v41 = vpop.f32.mrb[23].mxu0  ;;  %v1823_v6 = vrot.slane %v1711_v7, 3  ;;  %v1814_v38 = vrot.slane %v1711_v7, 2  ;;  %v2782_v7 = vld [vmem:[%s4020_s9 + $0x28] ss:$0 sps:$4 sm:$0x33]  }
 0x583   :  { %v1833_v45 = vrot.slane %v1713_v41, 4  ;;  %v1824_v11 = vrot.slane %v1713_v41, 3  ;;  %v2029_v41 = vsel %vm1198_vm11, %v2782_v7, 0  ;;  %s2822_s9 = smov [#allocation2]  }
 0x584   :  { %2335 = vmatpush3.bf16.msra.mxu1 %v2029_v41  ;;  %s2079_s12 = sshll.u32 %s2822_s9, 4  ;;  %s2080_s12 = int_to_ptr.vmem [resolvable:$true] %s2079_s12 }
 0x585   :  { %s2783_s8 = scalar_lea.vmem %s2080_s12, 32  ;;  %p2788_p1 = scmp.lt.s32.totalorder %s2080_s12, %s2080_s12 }
 0x586   :  { %1785 = vrot.lane.b32.xlu1 %v1782_v55, %s2821_s26  ;;  %1825 = vrot.lane.b32.xlu0 %v1823_v6, %s2821_s26  ;;  %p2784_p0 = scmp.ne.s32.totalorder %s2080_s12, %s2783_s8  ;;  %p2789_p2 = scmp.lt.s32.totalorder %s2783_s8, %s2783_s8 }
 0x588   :  { %p2790_p3 = por %p2789_p2, %p2788_p1 }
 0x58a   :  { %1817 = vrot.lane.b32.xlu1 %v1814_v38, %s2820_s5  ;;  %1835 = vrot.lane.b32.xlu0 %v1833_v45, %s2809_s24  ;;  %p2791_p4 = pnand %p2790_p3, %p2784_p0 }
 0x58e   :  { %1794 = vrot.lane.b32.xlu0 %v1792_v13, %s2809_s24  ;;  %1827 = vrot.lane.b32.xlu1 %v1824_v11, %s2821_s26 }
 0x593   :  { %v1750_v3 = vpop.f32.mrb[24].mxu0 }
 0x594   :  { %v2302_v49 = vpop.f32.mrb[25].mxu0  ;;  %v1793_v59 = vrot.slane %v1750_v3, 4 }
 0x595   :  { %v1753_v51 = vpop.f32.mrb[26].mxu0 }
 0x596   :  { %v1834_v54 = vrot.slane %v1753_v51, 4  ;;  %v2303_v57 = vpop.f32.mrb[27].mxu0 }
 0x598   :  { %1837 = vrot.lane.b32.xlu1 %v1834_v54, %s2809_s24 }
 0x59c   :  { %1796 = vrot.lane.b32.xlu1 %v1793_v59, %s2809_s24 }
 0x5e0   :  { %v1762_v1 = vpop.permute.xlu0 %1761 }
 0x5e1   :  { %v1764_v8 = vpop.permute.xlu1 %1763 }
 0x5e2   :  { %v1766_v56 = vsel %vm1765_vm15, %v1762_v1, %v1764_v8 }
 0x5e3   :  { %v1768_v50 = vadd.f32 %v1766_v56, %v3916_v39 }
 0x5e4   :  { %v1773_v14 = vpop.permute.xlu0 %1772 }
 0x5e5   :  { %v1808_v15 = vpop.permute.xlu1 %1807 }
 0x5e8   :  { %v1806_v16 = vpop.permute.xlu0 %1805 }
 0x5e9   :  { %v1809_v28 = vsel %vm1765_vm15, %v1806_v16, %v1808_v15 }
 0x5ea   :  { %v1811_v29 = vadd.f32 %v1809_v28, %v3919_v40 }
 0x5ec   :  { %v1816_v18 = vpop.permute.xlu0 %1815 }
 0x5f4   :  { %v1775_v23 = vpop.permute.xlu1 %1774  ;;  %v1784_v25 = vpop.permute.xlu0 %1783 }
 0x5f5   :  { %v1777_v9 = vsel %vm1776_vm0, %v1773_v14, %v1775_v23 }
 0x5f6   :  { %v1779_v48 = vadd.f32 %v1777_v9, %v1768_v50 }
 0x5f8   :  { %v1786_v17 = vpop.permute.xlu1 %1785  ;;  %v1826_v27 = vpop.permute.xlu0 %1825 }
 0x5f9   :  { %v1788_v5 = vsel %vm1787_vm1, %v1784_v25, %v1786_v17 }
 0x5fa   :  { %v1790_v63 = vadd.f32 %v1788_v5, %v1779_v48 }
 0x5fc   :  { %v1818_v26 = vpop.permute.xlu1 %1817  ;;  %v1836_v47 = vpop.permute.xlu0 %1835 }
 0x5fd   :  { %v1819_v4 = vsel %vm1776_vm0, %v1816_v18, %v1818_v26 }
 0x5fe   :  { %v1821_v37 = vadd.f32 %v1819_v4, %v1811_v29 }
 0x600   :  { %v1828_v44 = vpop.permute.xlu1 %1827  ;;  %v1795_v31 = vpop.permute.xlu0 %1794 }
 0x601   :  { %v1829_v30 = vsel %vm1787_vm1, %v1826_v27, %v1828_v44 }
 0x602   :  { %v1831_v10 = vadd.f32 %v1829_v30, %v1821_v37 }
 0x60a   :  { %v1838_v36 = vpop.permute.xlu1 %1837 }
 0x60b   :  { %v1839_v33 = vsel %vm83_vm2, %v1836_v47, %v1838_v36 }
 0x60c   :  { %v1841_v60 = vadd.f32 %v1839_v33, %v1831_v10 }
 0x60e   :  { %v1797_v32 = vpop.permute.xlu1 %1796  ;;  %v1843_v42 = vrot.slane %v1841_v60, 7 }
 0x60f   :  { %v1798_v40 = vsel %vm83_vm2, %v1795_v31, %v1797_v32  ;;  %vm2071_vm2 = vcmask 74752  }
 0x610   :  { %v1800_v19 = vadd.f32 %v1798_v40, %v1790_v63 }
 0x612   :  { %v1846_v39 = vsel %vm1845_vm3, %v1800_v19, %v1843_v42 }
 0x613   :  { %v1854_v22 = vadd.f32 %v2249_v0, %v1846_v39 }
 0x615   :  { %v1855_v24 = vmax.f32 %v1854_v22, 0.0 }
 0x617   :  { %v1856_v43 = vpack.c.bf16 %v1855_v24, %v1855_v24 }
 0x619   :  { %2321 = vmatmul.mubr.msk.bf16.vlgmr.msra.gmra.mrb[28].mxu0 %vm1924_vm4, %v1856_v43 }
 0x6ec   :  { %v1966_v55 = vpop.f32.mrb[28].mxu0 }
 0x6ed   :  { %v1967_v6 = vadd.f32 %v2250_v35, %v1966_v55  ;;  %v2322_v46 = vpop.f32.mrb[29].mxu0 }
 0x6ee   :  { %v1969_v38 = vpop.f32.mrb[30].mxu0 }
 0x6ef   :  { %v1972_v45 = vmax.f32 %v1967_v6, 0.0  ;;  %v2323_v13 = vpop.f32.mrb[31].mxu0 }
 0x6f1   :  { %v1973_v11 = vpack.c.bf16 %v1972_v45, %v1972_v45 }
 0x6f3   :  { %2337 = vmatmul.mubr.msk.bf16.vlgmr.msra.gmra.mrb[8].mxu1 %vm848_vm6, %v1973_v11 }
 0x7c6   :  { %v2065_v12 = vpop.f32.mrb[8].mxu1 }
 0x7c7   :  { %v2066_v21 = vadd.f32 %v2260_v20, %v2065_v12  ;;  %v2338_v3 = vpop.f32.mrb[9].mxu1 }
 0x7c8   :  { %v2068_v2 = vpop.f32.mrb[10].mxu1 }
 0x7c9   :  { %v2339_v49 = vpop.f32.mrb[11].mxu1  ;;  %2072 = vst.msk [vmem:[#allocation2] sm:$0x3] %vm2071_vm2, %v2066_v21 }
 0x7ca   :  { %2794 = shalt.err (!%p2791_p4)
}
 0x7cb   :  { %s2795_s10 = scalar_lea.hbm %s4022_s11, 32 }
 0x7cc   :  { %p2796_p5 = scmp.ne.s32.totalorder %s4022_s11, %s2795_s10  ;;  %p2799_p6 = scmp.lt.u32.totalorder %s2795_s10, %s4022_s11 }
 0x7ce   :  { %p2801_p7 = pnand %p2799_p6, %p2796_p5 }
 0x7d0   :  { %2804 = shalt.err (!%p2801_p7)
}
 0x7d1   :  { %2082 = dma.vmem_to_hbm [thread:$0]  %s2080_s12, 32, %s4022_s11, [#allocation3]  }
 0x7d2   :  { %2805 = dma.done.wait [#allocation3], 32  }
 0x7d3   :  { %2806 = vsyncadd [#allocation3], 4294967264 }
 0x7d4   :  { %2086 = vsyncpa [#allocation3], 1 }

</bundles_post_ra>
